<compile_context>
chip_gen: v7x
topology: tpu7x:2x2x1
jax: 0.10.0
libtpu: 0.0.40
codegen_flags: <defaults>
</compile_context>

<pallas_src>
import functools

import numpy as np
import jax
import jax.numpy as jnp
from jax import lax
from jax.experimental import pallas as pl
from jax.experimental.pallas import tpu as pltpu

_NP = 128          # padded energy-point (trapezoid) lane axis; 101 real points


def _atan_f32(z):
    """float32 arctan (Cephes atanf): range reduction + odd minimax polynomial.

    Uses only abs / where / div / mul / add so it always lowers in Mosaic
    (lax.atan has no Mosaic lowering).  |rel err| ~ 2.4e-7.
    """
    sgn = jnp.where(z < 0.0, -1.0, 1.0)
    az = jnp.abs(z)
    big = az > 2.414213562373095       # tan(3*pi/8)
    mid = az > 0.4142135623730951      # tan(pi/8)
    xr = jnp.where(big, -1.0 / az, jnp.where(mid, (az - 1.0) / (az + 1.0), az))
    y0 = jnp.where(big, np.pi / 2.0, jnp.where(mid, np.pi / 4.0, 0.0))
    z2 = xr * xr
    poly = ((8.05374449538e-2 * z2 - 1.38776856032e-1) * z2
            + 1.99777106478e-1) * z2 - 3.33329491539e-1
    return sgn * (y0 + poly * z2 * xr + xr)


def _fcn_kernel(*refs, n_layers, size, nsample, wc):
    nE = 4 * size + 1
    x_row_ref = refs[0]                          # (1, size)
    x_col_ref = refs[1]                          # (size, 1)
    w_refs = refs[2:2 + n_layers]
    b_refs = refs[2 + n_layers:2 + 2 * n_layers]
    out_ref = refs[2 + 2 * n_layers]             # (1, n_out_pad)

    # ---- MLP (moving average + chem-column permutation folded into layer -1)
    h = x_row_ref[...]
    for li in range(n_layers):
        h = jnp.dot(h, w_refs[li][...],
                    preferred_element_type=jnp.float32) + b_refs[li][...]
        if li < n_layers - 1:
            h = jnp.maximum(h, 0.0)              # ReLU (actfunc)
    sigma_row = h[:, :nE]                        # (1, nE)  == Sigma
    a_row = h[:, nE:nE + nsample]                # (1, nsample)  chem_Q[3i]
    c_row = h[:, nE + nsample:nE + 2 * nsample]  # (1, nsample)  chem_Q[3i+2]

    # out[-1] = sum(min(Sigma, 0))
    neg = jnp.sum(jnp.minimum(sigma_row, 0.0), axis=1, keepdims=True)  # (1,1)

    # ---- per-point constants, shared by every sample / every j --------------
    # newE[j,p]/x[j] = Wc*(p/50 - 1) is x-independent; fold the Fermi window,
    # the trapezoid weights, dE/x = Wc/50 and the f2 minus sign into per-p
    # lane vectors (every 1/x division cancels analytically).
    p_int = lax.broadcasted_iota(jnp.int32, (1, _NP), 1)
    u = wc * (p_int.astype(jnp.float32) / 50.0 - 1.0)          # (1, _NP)
    e = jnp.exp(-jnp.abs(u))
    sgm = jnp.where(u >= 0.0, 1.0 / (1.0 + e), e / (1.0 + e))  # stable sigmoid
    fermi = sgm * (1.0 - sgm)                                  # e^u/(e^u+1)^2
    w_tr = jnp.where(p_int > 100, 0.0,                         # pad lanes -> 0
                     jnp.where((p_int == 0) | (p_int == 100), 0.5, 1.0))
    scale = wc / 50.0
    g1 = fermi * w_tr * scale                                  # ->  trapz(f1)
    g2 = u * fermi * w_tr * (-scale)                           # -> -trapz(f2)/x

    x_row = x_row_ref[...]                                     # (1, size)
    x_col = x_col_ref[...]                                     # (size, 1)

    # Chem shift for ALL samples at once, already in grid-index units:
    # atan(a + c*x^2) * (2/pi) * Wc * size/Wc.
    chem_idx = _atan_f32(a_row + c_row * (x_col * x_col)) * (2.0 / np.pi) * float(size)

    # Base grid coordinate t0[j,p] = (x_j*u_p + 2*Wc) * size/Wc.
    base_t = (x_col * u + 2.0 * wc) * (float(size) / wc)       # (size, _NP)

    # ---- per-sample: interpolate Sigma (Sigma-first contraction) + trapz ----
    pieces = []
    for i in range(nsample):
        t = jnp.clip(base_t + chem_idx[:, i:i + 1], 0.0, float(nE - 1))
        # Clamp-to-edge linear interp via "hat" weights, contracted against
        # Sigma over the small static nE axis (unrolled: no rank-3 temporaries,
        # no spills -- only a few (size,128) vregs live).
        sig = None
        for ei in range(nE):
            hat = jnp.maximum(1.0 - jnp.abs(t - float(ei)), 0.0)  # (size,_NP)
            contrib = hat * sigma_row[:, ei:ei + 1]
            sig = contrib if sig is None else sig + contrib
        s1 = jnp.sum(sig * g1, axis=1).reshape(1, size)        #  trapz(f1,newE)
        s2 = jnp.sum(sig * g2, axis=1).reshape(1, size)        # -trapz(f2,newE)/x
        pieces.append(s1)
        pieces.append(x_row * s2)
    pieces.append(neg)

    # Single lane-dense store of the whole (padded) output row.
    n_out = 2 * size * nsample + 1
    pad = out_ref.shape[1] - n_out
    if pad > 0:
        pieces.append(jnp.zeros((1, pad), jnp.float32))
    out_ref[...] = jnp.concatenate(pieces, axis=1)


def _fcn_forward(x, weights, biases, *, Wc, Nsample):
    size = x.shape[0]
    n_layers = len(weights)
    nE = 4 * size + 1
    nQ = 4 * size + 10
    assert weights[-1].shape[1] >= nQ + 3 * Nsample, "MLP output too small"

    # Fold the 10-point moving average into the last Linear layer's weights
    # AND bias (banded matrix), and permute the chem_Q tail so the a / c
    # coefficients are contiguous (the b coefficient is multiplied by 0 in the
    # original forward and is dropped).
    rows = np.arange(nQ)[:, None]
    cols = np.arange(nE)[None, :]
    avg = jnp.asarray(((rows >= cols) & (rows < cols + 10)).astype(np.float32) / 10.0)
    hi = lax.Precision.HIGHEST
    a_cols = np.array([nQ + 3 * i for i in range(Nsample)])
    c_cols = np.array([nQ + 3 * i + 2 for i in range(Nsample)])
    w_last, b_last = weights[-1], biases[-1]
    w_fold = jnp.concatenate([jnp.dot(w_last[:, :nQ], avg, precision=hi),
                              w_last[:, a_cols], w_last[:, c_cols]], axis=1)
    b_fold = jnp.concatenate([jnp.dot(b_last[:, :nQ], avg, precision=hi),
                              b_last[:, a_cols], b_last[:, c_cols]], axis=1)
    weights = list(weights[:-1]) + [w_fold]
    biases = list(biases[:-1]) + [b_fold]

    x_row = x.reshape(1, size).astype(jnp.float32)
    x_col = x.reshape(size, 1).astype(jnp.float32)
    n_out = 2 * size * Nsample + 1
    n_out_pad = ((n_out + 127) // 128) * 128     # lane-dense unmasked store

    kernel = functools.partial(_fcn_kernel, n_layers=n_layers, size=size,
                               nsample=Nsample, wc=float(Wc))
    in_specs = [pl.BlockSpec(x_row.shape, lambda i: (0, 0)),
                pl.BlockSpec(x_col.shape, lambda i: (0, 0))]
    in_specs += [pl.BlockSpec(w.shape, lambda i: (0, 0)) for w in weights]
    in_specs += [pl.BlockSpec(b.shape, lambda i: (0, 0)) for b in biases]

    out = pl.pallas_call(
        kernel,
        grid=(1,),
        in_specs=in_specs,
        out_specs=pl.BlockSpec((1, n_out_pad), lambda i: (0, 0)),
        out_shape=jax.ShapeDtypeStruct((1, n_out_pad), jnp.float32),
        compiler_params=pltpu.CompilerParams(dimension_semantics=("arbitrary",)),
    )(x_row, x_col, *weights, *biases)
    return out[0, :n_out]


fcn_forward = jax.jit(_fcn_forward, static_argnames=("Wc", "Nsample"))


def fcn_reference(x, weights, biases, Wc, Nsample):
    """Pure-JAX mirror of FCN.forward (clamp-to-edge grid interpolation)."""
    size = x.shape[0]
    nE = 4 * size + 1
    nQ = 4 * size + 10
    hi = lax.Precision.HIGHEST
    h = x.reshape(1, size)
    for li, (w, b) in enumerate(zip(weights, biases)):
        h = jnp.dot(h, w, precision=hi) + b
        if li < len(weights) - 1:
            h = jnp.maximum(h, 0.0)
    h = h[0]
    Q = h[:nQ]
    Sigma = sum(Q[s:s + nE] for s in range(10)) / 10.0
    chem_Q = h[nQ:]
    p = jnp.arange(101, dtype=jnp.float32)
    outs = []
    for i in range(Nsample):
        chem = chem_Q[3 * i] + chem_Q[3 * i + 2] * x ** 2
        chem = jnp.arctan(chem) / (np.pi / 2.0) * Wc
        newE = Wc * x[:, None] * (p[None, :] / 50.0 - 1.0)       # (size, 101)
        t = (newE + chem[:, None] + 2.0 * Wc) * (size / Wc)
        t = jnp.clip(t, 0.0, nE - 1.0)
        i0 = jnp.clip(jnp.floor(t), 0, nE - 2).astype(jnp.int32)
        frac = t - i0
        newSigma = Sigma[i0] * (1.0 - frac) + Sigma[i0 + 1] * frac
        ex = jnp.exp(newE / x[:, None])
        f1 = newSigma * ex / (ex + 1.0) ** 2 / x[:, None]
        f2 = newE * f1
        dE = 2.0 * Wc * x / 100.0
        tr1 = (jnp.sum(f1, axis=1) - 0.5 * (f1[:, 0] + f1[:, 100])) * dE
        tr2 = (jnp.sum(f2, axis=1) - 0.5 * (f2[:, 0] + f2[:, 100])) * dE
        outs.append(tr1)
        outs.append(-tr2)
    outs.append(jnp.sum(jnp.minimum(Sigma, 0.0)).reshape(1))
    return jnp.concatenate(outs)


if __name__ == "__main__":
    size = 8
    Nsample = 2
    Wc = 1.0
    fcs = [size, 32, 4 * size + 10 + 3 * Nsample]                # [8, 32, 48]

    key = jax.random.PRNGKey(0)
    key, kx = jax.random.split(key)
    # x feeds both the MLP and the 1/x Fermi factors -> keep it away from 0.
    x = jax.random.uniform(kx, (size,), jnp.float32, 0.5, 1.5)

    weights, biases = [], []
    for li in range(len(fcs) - 1):
        key, kw, kb = jax.random.split(key, 3)
        bound = 1.0 / np.sqrt(fcs[li])
        weights.append(jax.random.uniform(kw, (fcs[li], fcs[li + 1]),
                                          jnp.float32, -bound, bound))
        biases.append(jax.random.uniform(kb, (1, fcs[li + 1]),
                                         jnp.float32, -bound, bound))

    out = fcn_forward(x, weights, biases, Wc=Wc, Nsample=Nsample)
    out = jax.block_until_ready(out)
    assert out.shape == (2 * size * Nsample + 1,), out.shape
    assert bool(jnp.all(jnp.isfinite(out)))

    ref = fcn_reference(x, weights, biases, Wc, Nsample)
    assert jnp.allclose(out, ref, rtol=2e-3, atol=1e-5), (
        float(jnp.max(jnp.abs(out - ref))))
    print("KERNEL_OK")
</pallas_src>

<mosaic_0001>
module attributes {stable_mosaic.version = 11 : i64} {
  func.func @_fcn_kernel(%arg0: i32, %arg1: memref<1x8xf32, #tpu.memory_space<vmem>>, %arg2: memref<8x1xf32, #tpu.memory_space<vmem>>, %arg3: memref<8x32xf32, #tpu.memory_space<vmem>>, %arg4: memref<32x37xf32, #tpu.memory_space<vmem>>, %arg5: memref<1x32xf32, #tpu.memory_space<vmem>>, %arg6: memref<1x37xf32, #tpu.memory_space<vmem>>, %arg7: memref<1x128xf32, #tpu.memory_space<vmem>>) attributes {dimension_semantics = [#tpu.dimension_semantics<arbitrary>], iteration_bounds = array<i64: 1>, scalar_prefetch = 0 : i64, scratch_operands = 0 : i64, tpu.core_type = #tpu.core_type<tc>, window_params = [{pipeline_mode = #tpu.pipeline_mode<synchronous>, transform_indices = @transform_0, window_bounds = array<i64: 1, 8>}, {pipeline_mode = #tpu.pipeline_mode<synchronous>, transform_indices = @transform_1, window_bounds = array<i64: 8, 1>}, {pipeline_mode = #tpu.pipeline_mode<synchronous>, transform_indices = @transform_2, window_bounds = array<i64: 8, 32>}, {pipeline_mode = #tpu.pipeline_mode<synchronous>, transform_indices = @transform_3, window_bounds = array<i64: 32, 37>}, {pipeline_mode = #tpu.pipeline_mode<synchronous>, transform_indices = @transform_4, window_bounds = array<i64: 1, 32>}, {pipeline_mode = #tpu.pipeline_mode<synchronous>, transform_indices = @transform_5, window_bounds = array<i64: 1, 37>}, {pipeline_mode = #tpu.pipeline_mode<synchronous>, transform_indices = @transform_6, window_bounds = array<i64: 1, 128>}]} {
    %c0 = arith.constant 0 : index
    %c0_0 = arith.constant 0 : index
    %0 = vector.load %arg1[%c0, %c0_0] : memref<1x8xf32, #tpu.memory_space<vmem>>, vector<1x8xf32>
    %c0_1 = arith.constant 0 : index
    %c0_2 = arith.constant 0 : index
    %1 = vector.load %arg3[%c0_1, %c0_2] : memref<8x32xf32, #tpu.memory_space<vmem>>, vector<8x32xf32>
    %cst = arith.constant dense<0.000000e+00> : vector<1x32xf32>
    %2 = tpu.matmul %0, %1, %cst {dimension_numbers = #tpu.dot_dimension_numbers<[1], [0], [0], [1], [0, 0, 1, 1], [], []>} : vector<1x8xf32>, vector<8x32xf32>, vector<1x32xf32> -> vector<1x32xf32>
    %c0_3 = arith.constant 0 : index
    %c0_4 = arith.constant 0 : index
    %3 = vector.load %arg5[%c0_3, %c0_4] : memref<1x32xf32, #tpu.memory_space<vmem>>, vector<1x32xf32>
    %4 = arith.addf %2, %3 : vector<1x32xf32>
    %cst_5 = arith.constant 0.000000e+00 : f32
    %5 = vector.broadcast %cst_5 : f32 to vector<1x32xf32>
    %6 = arith.maximumf %4, %5 : vector<1x32xf32>
    %c0_6 = arith.constant 0 : index
    %c0_7 = arith.constant 0 : index
    %7 = vector.load %arg4[%c0_6, %c0_7] : memref<32x37xf32, #tpu.memory_space<vmem>>, vector<32x37xf32>
    %cst_8 = arith.constant dense<0.000000e+00> : vector<1x37xf32>
    %8 = tpu.matmul %6, %7, %cst_8 {dimension_numbers = #tpu.dot_dimension_numbers<[1], [0], [0], [1], [0, 0, 1, 1], [], []>} : vector<1x32xf32>, vector<32x37xf32>, vector<1x37xf32> -> vector<1x37xf32>
    %c0_9 = arith.constant 0 : index
    %c0_10 = arith.constant 0 : index
    %9 = vector.load %arg6[%c0_9, %c0_10] : memref<1x37xf32, #tpu.memory_space<vmem>>, vector<1x37xf32>
    %10 = arith.addf %8, %9 : vector<1x37xf32>
    %11 = vector.extract_strided_slice %10 {offsets = [0, 0], sizes = [1, 33], strides = [1, 1]} : vector<1x37xf32> to vector<1x33xf32>
    %12 = vector.extract_strided_slice %10 {offsets = [0, 33], sizes = [1, 2], strides = [1, 1]} : vector<1x37xf32> to vector<1x2xf32>
    %13 = vector.extract_strided_slice %10 {offsets = [0, 35], sizes = [1, 2], strides = [1, 1]} : vector<1x37xf32> to vector<1x2xf32>
    %cst_11 = arith.constant 0.000000e+00 : f32
    %14 = vector.broadcast %cst_11 : f32 to vector<1x33xf32>
    %15 = arith.minimumf %11, %14 : vector<1x33xf32>
    %cst_12 = arith.constant dense<0.000000e+00> : vector<1xf32>
    %16 = vector.multi_reduction <add>, %15, %cst_12 [1] : vector<1x33xf32> to vector<1xf32>
    %17 = vector.shape_cast %16 : vector<1xf32> to vector<1x1xf32>
    %18 = tpu.iota {dimensions = array<i32: 1>} : vector<1x128xi32>
    %19 = arith.sitofp %18 : vector<1x128xi32> to vector<1x128xf32>
    %cst_13 = arith.constant 5.000000e+01 : f32
    %20 = vector.broadcast %cst_13 : f32 to vector<1x128xf32>
    %21 = arith.divf %19, %20 : vector<1x128xf32>
    %cst_14 = arith.constant 1.000000e+00 : f32
    %22 = vector.broadcast %cst_14 : f32 to vector<1x128xf32>
    %23 = arith.subf %21, %22 : vector<1x128xf32>
    %cst_15 = arith.constant 1.000000e+00 : f32
    %24 = vector.broadcast %cst_15 : f32 to vector<1x128xf32>
    %25 = arith.mulf %24, %23 : vector<1x128xf32>
    %26 = math.absf %25 : vector<1x128xf32>
    %cst_16 = arith.constant 0.000000e+00 : f32
    %27 = vector.broadcast %cst_16 : f32 to vector<1x128xf32>
    %28 = arith.subf %27, %26 : vector<1x128xf32>
    %29 = math.exp %28 : vector<1x128xf32>
    %cst_17 = arith.constant 0.000000e+00 : f32
    %30 = vector.broadcast %cst_17 : f32 to vector<1x128xf32>
    %31 = arith.cmpf oge, %25, %30 : vector<1x128xf32>
    %cst_18 = arith.constant 1.000000e+00 : f32
    %32 = vector.broadcast %cst_18 : f32 to vector<1x128xf32>
    %33 = arith.addf %32, %29 : vector<1x128xf32>
    %cst_19 = arith.constant 1.000000e+00 : f32
    %34 = vector.broadcast %cst_19 : f32 to vector<1x128xf32>
    %35 = arith.divf %34, %33 : vector<1x128xf32>
    %cst_20 = arith.constant 1.000000e+00 : f32
    %36 = vector.broadcast %cst_20 : f32 to vector<1x128xf32>
    %37 = arith.addf %36, %29 : vector<1x128xf32>
    %38 = arith.divf %29, %37 : vector<1x128xf32>
    %39 = arith.select %31, %35, %38 : vector<1x128xi1>, vector<1x128xf32>
    %cst_21 = arith.constant 1.000000e+00 : f32
    %40 = vector.broadcast %cst_21 : f32 to vector<1x128xf32>
    %41 = arith.subf %40, %39 : vector<1x128xf32>
    %42 = arith.mulf %39, %41 : vector<1x128xf32>
    %c100_i32 = arith.constant 100 : i32
    %43 = vector.broadcast %c100_i32 : i32 to vector<1x128xi32>
    %44 = arith.cmpi sgt, %18, %43 : vector<1x128xi32>
    %c0_i32 = arith.constant 0 : i32
    %45 = vector.broadcast %c0_i32 : i32 to vector<1x128xi32>
    %46 = arith.cmpi eq, %18, %45 : vector<1x128xi32>
    %c100_i32_22 = arith.constant 100 : i32
    %47 = vector.broadcast %c100_i32_22 : i32 to vector<1x128xi32>
    %48 = arith.cmpi eq, %18, %47 : vector<1x128xi32>
    %49 = arith.ori %46, %48 : vector<1x128xi1>
    %cst_23 = arith.constant 5.000000e-01 : f32
    %cst_24 = arith.constant 1.000000e+00 : f32
    %50 = vector.broadcast %cst_23 : f32 to vector<1x128xf32>
    %51 = vector.broadcast %cst_24 : f32 to vector<1x128xf32>
    %52 = arith.select %49, %50, %51 : vector<1x128xi1>, vector<1x128xf32>
    %cst_25 = arith.constant 0.000000e+00 : f32
    %53 = vector.broadcast %cst_25 : f32 to vector<1x128xf32>
    %54 = arith.select %44, %53, %52 : vector<1x128xi1>, vector<1x128xf32>
    %55 = arith.mulf %42, %54 : vector<1x128xf32>
    %cst_26 = arith.constant 2.000000e-02 : f32
    %56 = vector.broadcast %cst_26 : f32 to vector<1x128xf32>
    %57 = arith.mulf %55, %56 : vector<1x128xf32>
    %58 = arith.mulf %25, %42 : vector<1x128xf32>
    %59 = arith.mulf %58, %54 : vector<1x128xf32>
    %cst_27 = arith.constant -2.000000e-02 : f32
    %60 = vector.broadcast %cst_27 : f32 to vector<1x128xf32>
    %61 = arith.mulf %59, %60 : vector<1x128xf32>
    %c0_28 = arith.constant 0 : index
    %c0_29 = arith.constant 0 : index
    %62 = vector.load %arg1[%c0_28, %c0_29] : memref<1x8xf32, #tpu.memory_space<vmem>>, vector<1x8xf32>
    %c0_30 = arith.constant 0 : index
    %c0_31 = arith.constant 0 : index
    %63 = vector.load %arg2[%c0_30, %c0_31] : memref<8x1xf32, #tpu.memory_space<vmem>>, vector<8x1xf32>
    %64 = arith.mulf %63, %63 : vector<8x1xf32>
    %65 = vector.broadcast %13 : vector<1x2xf32> to vector<8x2xf32>
    %66 = vector.broadcast %64 : vector<8x1xf32> to vector<8x2xf32>
    %67 = arith.mulf %65, %66 : vector<8x2xf32>
    %68 = vector.broadcast %12 : vector<1x2xf32> to vector<8x2xf32>
    %69 = arith.addf %68, %67 : vector<8x2xf32>
    %cst_32 = arith.constant 0.000000e+00 : f32
    %70 = vector.broadcast %cst_32 : f32 to vector<8x2xf32>
    %71 = arith.cmpf olt, %69, %70 : vector<8x2xf32>
    %cst_33 = arith.constant -1.000000e+00 : f32
    %cst_34 = arith.constant 1.000000e+00 : f32
    %72 = vector.broadcast %cst_33 : f32 to vector<8x2xf32>
    %73 = vector.broadcast %cst_34 : f32 to vector<8x2xf32>
    %74 = arith.select %71, %72, %73 : vector<8x2xi1>, vector<8x2xf32>
    %75 = math.absf %69 : vector<8x2xf32>
    %cst_35 = arith.constant 2.41421366 : f32
    %76 = vector.broadcast %cst_35 : f32 to vector<8x2xf32>
    %77 = arith.cmpf ogt, %75, %76 : vector<8x2xf32>
    %cst_36 = arith.constant 0.414213568 : f32
    %78 = vector.broadcast %cst_36 : f32 to vector<8x2xf32>
    %79 = arith.cmpf ogt, %75, %78 : vector<8x2xf32>
    %cst_37 = arith.constant -1.000000e+00 : f32
    %80 = vector.broadcast %cst_37 : f32 to vector<8x2xf32>
    %81 = arith.divf %80, %75 : vector<8x2xf32>
    %cst_38 = arith.constant 1.000000e+00 : f32
    %82 = vector.broadcast %cst_38 : f32 to vector<8x2xf32>
    %83 = arith.subf %75, %82 : vector<8x2xf32>
    %cst_39 = arith.constant 1.000000e+00 : f32
    %84 = vector.broadcast %cst_39 : f32 to vector<8x2xf32>
    %85 = arith.addf %75, %84 : vector<8x2xf32>
    %86 = arith.divf %83, %85 : vector<8x2xf32>
    %87 = arith.select %79, %86, %75 : vector<8x2xi1>, vector<8x2xf32>
    %88 = arith.select %77, %81, %87 : vector<8x2xi1>, vector<8x2xf32>
    %cst_40 = arith.constant 0.785398185 : f32
    %cst_41 = arith.constant 0.000000e+00 : f32
    %89 = vector.broadcast %cst_40 : f32 to vector<8x2xf32>
    %90 = vector.broadcast %cst_41 : f32 to vector<8x2xf32>
    %91 = arith.select %79, %89, %90 : vector<8x2xi1>, vector<8x2xf32>
    %cst_42 = arith.constant 1.57079637 : f32
    %92 = vector.broadcast %cst_42 : f32 to vector<8x2xf32>
    %93 = arith.select %77, %92, %91 : vector<8x2xi1>, vector<8x2xf32>
    %94 = arith.mulf %88, %88 : vector<8x2xf32>
    %cst_43 = arith.constant 0.0805374458 : f32
    %95 = vector.broadcast %cst_43 : f32 to vector<8x2xf32>
    %96 = arith.mulf %95, %94 : vector<8x2xf32>
    %cst_44 = arith.constant 0.138776854 : f32
    %97 = vector.broadcast %cst_44 : f32 to vector<8x2xf32>
    %98 = arith.subf %96, %97 : vector<8x2xf32>
    %99 = arith.mulf %98, %94 : vector<8x2xf32>
    %cst_45 = arith.constant 0.199777111 : f32
    %100 = vector.broadcast %cst_45 : f32 to vector<8x2xf32>
    %101 = arith.addf %99, %100 : vector<8x2xf32>
    %102 = arith.mulf %101, %94 : vector<8x2xf32>
    %cst_46 = arith.constant 0.333329499 : f32
    %103 = vector.broadcast %cst_46 : f32 to vector<8x2xf32>
    %104 = arith.subf %102, %103 : vector<8x2xf32>
    %105 = arith.mulf %104, %94 : vector<8x2xf32>
    %106 = arith.mulf %105, %88 : vector<8x2xf32>
    %107 = arith.addf %93, %106 : vector<8x2xf32>
    %108 = arith.addf %107, %88 : vector<8x2xf32>
    %109 = arith.mulf %74, %108 : vector<8x2xf32>
    %cst_47 = arith.constant 0.636619746 : f32
    %110 = vector.broadcast %cst_47 : f32 to vector<8x2xf32>
    %111 = arith.mulf %109, %110 : vector<8x2xf32>
    %cst_48 = arith.constant 8.000000e+00 : f32
    %112 = vector.broadcast %cst_48 : f32 to vector<8x2xf32>
    %113 = arith.mulf %111, %112 : vector<8x2xf32>
    %114 = vector.broadcast %63 : vector<8x1xf32> to vector<8x128xf32>
    %115 = vector.broadcast %25 : vector<1x128xf32> to vector<8x128xf32>
    %116 = arith.mulf %114, %115 : vector<8x128xf32>
    %cst_49 = arith.constant 2.000000e+00 : f32
    %117 = vector.broadcast %cst_49 : f32 to vector<8x128xf32>
    %118 = arith.addf %116, %117 : vector<8x128xf32>
    %cst_50 = arith.constant 8.000000e+00 : f32
    %119 = vector.broadcast %cst_50 : f32 to vector<8x128xf32>
    %120 = arith.mulf %118, %119 : vector<8x128xf32>
    %121 = vector.extract_strided_slice %113 {offsets = [0, 0], sizes = [8, 1], strides = [1, 1]} : vector<8x2xf32> to vector<8x1xf32>
    %122 = vector.broadcast %121 : vector<8x1xf32> to vector<8x128xf32>
    %123 = arith.addf %120, %122 : vector<8x128xf32>
    %cst_51 = arith.constant 0.000000e+00 : f32
    %cst_52 = arith.constant 3.200000e+01 : f32
    %124 = vector.broadcast %cst_51 : f32 to vector<8x128xf32>
    %125 = arith.maximumf %124, %123 : vector<8x128xf32>
    %126 = vector.broadcast %cst_52 : f32 to vector<8x128xf32>
    %127 = arith.minimumf %126, %125 : vector<8x128xf32>
    %cst_53 = arith.constant 0.000000e+00 : f32
    %128 = vector.broadcast %cst_53 : f32 to vector<8x128xf32>
    %129 = arith.subf %127, %128 : vector<8x128xf32>
    %130 = math.absf %129 : vector<8x128xf32>
    %cst_54 = arith.constant 1.000000e+00 : f32
    %131 = vector.broadcast %cst_54 : f32 to vector<8x128xf32>
    %132 = arith.subf %131, %130 : vector<8x128xf32>
    %cst_55 = arith.constant 0.000000e+00 : f32
    %133 = vector.broadcast %cst_55 : f32 to vector<8x128xf32>
    %134 = arith.maximumf %132, %133 : vector<8x128xf32>
    %135 = vector.extract_strided_slice %11 {offsets = [0, 0], sizes = [1, 1], strides = [1, 1]} : vector<1x33xf32> to vector<1x1xf32>
    %136 = vector.broadcast %135 : vector<1x1xf32> to vector<8x128xf32>
    %137 = arith.mulf %134, %136 : vector<8x128xf32>
    %cst_56 = arith.constant 1.000000e+00 : f32
    %138 = vector.broadcast %cst_56 : f32 to vector<8x128xf32>
    %139 = arith.subf %127, %138 : vector<8x128xf32>
    %140 = math.absf %139 : vector<8x128xf32>
    %cst_57 = arith.constant 1.000000e+00 : f32
    %141 = vector.broadcast %cst_57 : f32 to vector<8x128xf32>
    %142 = arith.subf %141, %140 : vector<8x128xf32>
    %cst_58 = arith.constant 0.000000e+00 : f32
    %143 = vector.broadcast %cst_58 : f32 to vector<8x128xf32>
    %144 = arith.maximumf %142, %143 : vector<8x128xf32>
    %145 = vector.extract_strided_slice %11 {offsets = [0, 1], sizes = [1, 1], strides = [1, 1]} : vector<1x33xf32> to vector<1x1xf32>
    %146 = vector.broadcast %145 : vector<1x1xf32> to vector<8x128xf32>
    %147 = arith.mulf %144, %146 : vector<8x128xf32>
    %148 = arith.addf %137, %147 : vector<8x128xf32>
    %cst_59 = arith.constant 2.000000e+00 : f32
    %149 = vector.broadcast %cst_59 : f32 to vector<8x128xf32>
    %150 = arith.subf %127, %149 : vector<8x128xf32>
    %151 = math.absf %150 : vector<8x128xf32>
    %cst_60 = arith.constant 1.000000e+00 : f32
    %152 = vector.broadcast %cst_60 : f32 to vector<8x128xf32>
    %153 = arith.subf %152, %151 : vector<8x128xf32>
    %cst_61 = arith.constant 0.000000e+00 : f32
    %154 = vector.broadcast %cst_61 : f32 to vector<8x128xf32>
    %155 = arith.maximumf %153, %154 : vector<8x128xf32>
    %156 = vector.extract_strided_slice %11 {offsets = [0, 2], sizes = [1, 1], strides = [1, 1]} : vector<1x33xf32> to vector<1x1xf32>
    %157 = vector.broadcast %156 : vector<1x1xf32> to vector<8x128xf32>
    %158 = arith.mulf %155, %157 : vector<8x128xf32>
    %159 = arith.addf %148, %158 : vector<8x128xf32>
    %cst_62 = arith.constant 3.000000e+00 : f32
    %160 = vector.broadcast %cst_62 : f32 to vector<8x128xf32>
    %161 = arith.subf %127, %160 : vector<8x128xf32>
    %162 = math.absf %161 : vector<8x128xf32>
    %cst_63 = arith.constant 1.000000e+00 : f32
    %163 = vector.broadcast %cst_63 : f32 to vector<8x128xf32>
    %164 = arith.subf %163, %162 : vector<8x128xf32>
    %cst_64 = arith.constant 0.000000e+00 : f32
    %165 = vector.broadcast %cst_64 : f32 to vector<8x128xf32>
    %166 = arith.maximumf %164, %165 : vector<8x128xf32>
    %167 = vector.extract_strided_slice %11 {offsets = [0, 3], sizes = [1, 1], strides = [1, 1]} : vector<1x33xf32> to vector<1x1xf32>
    %168 = vector.broadcast %167 : vector<1x1xf32> to vector<8x128xf32>
    %169 = arith.mulf %166, %168 : vector<8x128xf32>
    %170 = arith.addf %159, %169 : vector<8x128xf32>
    %cst_65 = arith.constant 4.000000e+00 : f32
    %171 = vector.broadcast %cst_65 : f32 to vector<8x128xf32>
    %172 = arith.subf %127, %171 : vector<8x128xf32>
    %173 = math.absf %172 : vector<8x128xf32>
    %cst_66 = arith.constant 1.000000e+00 : f32
    %174 = vector.broadcast %cst_66 : f32 to vector<8x128xf32>
    %175 = arith.subf %174, %173 : vector<8x128xf32>
    %cst_67 = arith.constant 0.000000e+00 : f32
    %176 = vector.broadcast %cst_67 : f32 to vector<8x128xf32>
    %177 = arith.maximumf %175, %176 : vector<8x128xf32>
    %178 = vector.extract_strided_slice %11 {offsets = [0, 4], sizes = [1, 1], strides = [1, 1]} : vector<1x33xf32> to vector<1x1xf32>
    %179 = vector.broadcast %178 : vector<1x1xf32> to vector<8x128xf32>
    %180 = arith.mulf %177, %179 : vector<8x128xf32>
    %181 = arith.addf %170, %180 : vector<8x128xf32>
    %cst_68 = arith.constant 5.000000e+00 : f32
    %182 = vector.broadcast %cst_68 : f32 to vector<8x128xf32>
    %183 = arith.subf %127, %182 : vector<8x128xf32>
    %184 = math.absf %183 : vector<8x128xf32>
    %cst_69 = arith.constant 1.000000e+00 : f32
    %185 = vector.broadcast %cst_69 : f32 to vector<8x128xf32>
    %186 = arith.subf %185, %184 : vector<8x128xf32>
    %cst_70 = arith.constant 0.000000e+00 : f32
    %187 = vector.broadcast %cst_70 : f32 to vector<8x128xf32>
    %188 = arith.maximumf %186, %187 : vector<8x128xf32>
    %189 = vector.extract_strided_slice %11 {offsets = [0, 5], sizes = [1, 1], strides = [1, 1]} : vector<1x33xf32> to vector<1x1xf32>
    %190 = vector.broadcast %189 : vector<1x1xf32> to vector<8x128xf32>
    %191 = arith.mulf %188, %190 : vector<8x128xf32>
    %192 = arith.addf %181, %191 : vector<8x128xf32>
    %cst_71 = arith.constant 6.000000e+00 : f32
    %193 = vector.broadcast %cst_71 : f32 to vector<8x128xf32>
    %194 = arith.subf %127, %193 : vector<8x128xf32>
    %195 = math.absf %194 : vector<8x128xf32>
    %cst_72 = arith.constant 1.000000e+00 : f32
    %196 = vector.broadcast %cst_72 : f32 to vector<8x128xf32>
    %197 = arith.subf %196, %195 : vector<8x128xf32>
    %cst_73 = arith.constant 0.000000e+00 : f32
    %198 = vector.broadcast %cst_73 : f32 to vector<8x128xf32>
    %199 = arith.maximumf %197, %198 : vector<8x128xf32>
    %200 = vector.extract_strided_slice %11 {offsets = [0, 6], sizes = [1, 1], strides = [1, 1]} : vector<1x33xf32> to vector<1x1xf32>
    %201 = vector.broadcast %200 : vector<1x1xf32> to vector<8x128xf32>
    %202 = arith.mulf %199, %201 : vector<8x128xf32>
    %203 = arith.addf %192, %202 : vector<8x128xf32>
    %cst_74 = arith.constant 7.000000e+00 : f32
    %204 = vector.broadcast %cst_74 : f32 to vector<8x128xf32>
    %205 = arith.subf %127, %204 : vector<8x128xf32>
    %206 = math.absf %205 : vector<8x128xf32>
    %cst_75 = arith.constant 1.000000e+00 : f32
    %207 = vector.broadcast %cst_75 : f32 to vector<8x128xf32>
    %208 = arith.subf %207, %206 : vector<8x128xf32>
    %cst_76 = arith.constant 0.000000e+00 : f32
    %209 = vector.broadcast %cst_76 : f32 to vector<8x128xf32>
    %210 = arith.maximumf %208, %209 : vector<8x128xf32>
    %211 = vector.extract_strided_slice %11 {offsets = [0, 7], sizes = [1, 1], strides = [1, 1]} : vector<1x33xf32> to vector<1x1xf32>
    %212 = vector.broadcast %211 : vector<1x1xf32> to vector<8x128xf32>
    %213 = arith.mulf %210, %212 : vector<8x128xf32>
    %214 = arith.addf %203, %213 : vector<8x128xf32>
    %cst_77 = arith.constant 8.000000e+00 : f32
    %215 = vector.broadcast %cst_77 : f32 to vector<8x128xf32>
    %216 = arith.subf %127, %215 : vector<8x128xf32>
    %217 = math.absf %216 : vector<8x128xf32>
    %cst_78 = arith.constant 1.000000e+00 : f32
    %218 = vector.broadcast %cst_78 : f32 to vector<8x128xf32>
    %219 = arith.subf %218, %217 : vector<8x128xf32>
    %cst_79 = arith.constant 0.000000e+00 : f32
    %220 = vector.broadcast %cst_79 : f32 to vector<8x128xf32>
    %221 = arith.maximumf %219, %220 : vector<8x128xf32>
    %222 = vector.extract_strided_slice %11 {offsets = [0, 8], sizes = [1, 1], strides = [1, 1]} : vector<1x33xf32> to vector<1x1xf32>
    %223 = vector.broadcast %222 : vector<1x1xf32> to vector<8x128xf32>
    %224 = arith.mulf %221, %223 : vector<8x128xf32>
    %225 = arith.addf %214, %224 : vector<8x128xf32>
    %cst_80 = arith.constant 9.000000e+00 : f32
    %226 = vector.broadcast %cst_80 : f32 to vector<8x128xf32>
    %227 = arith.subf %127, %226 : vector<8x128xf32>
    %228 = math.absf %227 : vector<8x128xf32>
    %cst_81 = arith.constant 1.000000e+00 : f32
    %229 = vector.broadcast %cst_81 : f32 to vector<8x128xf32>
    %230 = arith.subf %229, %228 : vector<8x128xf32>
    %cst_82 = arith.constant 0.000000e+00 : f32
    %231 = vector.broadcast %cst_82 : f32 to vector<8x128xf32>
    %232 = arith.maximumf %230, %231 : vector<8x128xf32>
    %233 = vector.extract_strided_slice %11 {offsets = [0, 9], sizes = [1, 1], strides = [1, 1]} : vector<1x33xf32> to vector<1x1xf32>
    %234 = vector.broadcast %233 : vector<1x1xf32> to vector<8x128xf32>
    %235 = arith.mulf %232, %234 : vector<8x128xf32>
    %236 = arith.addf %225, %235 : vector<8x128xf32>
    %cst_83 = arith.constant 1.000000e+01 : f32
    %237 = vector.broadcast %cst_83 : f32 to vector<8x128xf32>
    %238 = arith.subf %127, %237 : vector<8x128xf32>
    %239 = math.absf %238 : vector<8x128xf32>
    %cst_84 = arith.constant 1.000000e+00 : f32
    %240 = vector.broadcast %cst_84 : f32 to vector<8x128xf32>
    %241 = arith.subf %240, %239 : vector<8x128xf32>
    %cst_85 = arith.constant 0.000000e+00 : f32
    %242 = vector.broadcast %cst_85 : f32 to vector<8x128xf32>
    %243 = arith.maximumf %241, %242 : vector<8x128xf32>
    %244 = vector.extract_strided_slice %11 {offsets = [0, 10], sizes = [1, 1], strides = [1, 1]} : vector<1x33xf32> to vector<1x1xf32>
    %245 = vector.broadcast %244 : vector<1x1xf32> to vector<8x128xf32>
    %246 = arith.mulf %243, %245 : vector<8x128xf32>
    %247 = arith.addf %236, %246 : vector<8x128xf32>
    %cst_86 = arith.constant 1.100000e+01 : f32
    %248 = vector.broadcast %cst_86 : f32 to vector<8x128xf32>
    %249 = arith.subf %127, %248 : vector<8x128xf32>
    %250 = math.absf %249 : vector<8x128xf32>
    %cst_87 = arith.constant 1.000000e+00 : f32
    %251 = vector.broadcast %cst_87 : f32 to vector<8x128xf32>
    %252 = arith.subf %251, %250 : vector<8x128xf32>
    %cst_88 = arith.constant 0.000000e+00 : f32
    %253 = vector.broadcast %cst_88 : f32 to vector<8x128xf32>
    %254 = arith.maximumf %252, %253 : vector<8x128xf32>
    %255 = vector.extract_strided_slice %11 {offsets = [0, 11], sizes = [1, 1], strides = [1, 1]} : vector<1x33xf32> to vector<1x1xf32>
    %256 = vector.broadcast %255 : vector<1x1xf32> to vector<8x128xf32>
    %257 = arith.mulf %254, %256 : vector<8x128xf32>
    %258 = arith.addf %247, %257 : vector<8x128xf32>
    %cst_89 = arith.constant 1.200000e+01 : f32
    %259 = vector.broadcast %cst_89 : f32 to vector<8x128xf32>
    %260 = arith.subf %127, %259 : vector<8x128xf32>
    %261 = math.absf %260 : vector<8x128xf32>
    %cst_90 = arith.constant 1.000000e+00 : f32
    %262 = vector.broadcast %cst_90 : f32 to vector<8x128xf32>
    %263 = arith.subf %262, %261 : vector<8x128xf32>
    %cst_91 = arith.constant 0.000000e+00 : f32
    %264 = vector.broadcast %cst_91 : f32 to vector<8x128xf32>
    %265 = arith.maximumf %263, %264 : vector<8x128xf32>
    %266 = vector.extract_strided_slice %11 {offsets = [0, 12], sizes = [1, 1], strides = [1, 1]} : vector<1x33xf32> to vector<1x1xf32>
    %267 = vector.broadcast %266 : vector<1x1xf32> to vector<8x128xf32>
    %268 = arith.mulf %265, %267 : vector<8x128xf32>
    %269 = arith.addf %258, %268 : vector<8x128xf32>
    %cst_92 = arith.constant 1.300000e+01 : f32
    %270 = vector.broadcast %cst_92 : f32 to vector<8x128xf32>
    %271 = arith.subf %127, %270 : vector<8x128xf32>
    %272 = math.absf %271 : vector<8x128xf32>
    %cst_93 = arith.constant 1.000000e+00 : f32
    %273 = vector.broadcast %cst_93 : f32 to vector<8x128xf32>
    %274 = arith.subf %273, %272 : vector<8x128xf32>
    %cst_94 = arith.constant 0.000000e+00 : f32
    %275 = vector.broadcast %cst_94 : f32 to vector<8x128xf32>
    %276 = arith.maximumf %274, %275 : vector<8x128xf32>
    %277 = vector.extract_strided_slice %11 {offsets = [0, 13], sizes = [1, 1], strides = [1, 1]} : vector<1x33xf32> to vector<1x1xf32>
    %278 = vector.broadcast %277 : vector<1x1xf32> to vector<8x128xf32>
    %279 = arith.mulf %276, %278 : vector<8x128xf32>
    %280 = arith.addf %269, %279 : vector<8x128xf32>
    %cst_95 = arith.constant 1.400000e+01 : f32
    %281 = vector.broadcast %cst_95 : f32 to vector<8x128xf32>
    %282 = arith.subf %127, %281 : vector<8x128xf32>
    %283 = math.absf %282 : vector<8x128xf32>
    %cst_96 = arith.constant 1.000000e+00 : f32
    %284 = vector.broadcast %cst_96 : f32 to vector<8x128xf32>
    %285 = arith.subf %284, %283 : vector<8x128xf32>
    %cst_97 = arith.constant 0.000000e+00 : f32
    %286 = vector.broadcast %cst_97 : f32 to vector<8x128xf32>
    %287 = arith.maximumf %285, %286 : vector<8x128xf32>
    %288 = vector.extract_strided_slice %11 {offsets = [0, 14], sizes = [1, 1], strides = [1, 1]} : vector<1x33xf32> to vector<1x1xf32>
    %289 = vector.broadcast %288 : vector<1x1xf32> to vector<8x128xf32>
    %290 = arith.mulf %287, %289 : vector<8x128xf32>
    %291 = arith.addf %280, %290 : vector<8x128xf32>
    %cst_98 = arith.constant 1.500000e+01 : f32
    %292 = vector.broadcast %cst_98 : f32 to vector<8x128xf32>
    %293 = arith.subf %127, %292 : vector<8x128xf32>
    %294 = math.absf %293 : vector<8x128xf32>
    %cst_99 = arith.constant 1.000000e+00 : f32
    %295 = vector.broadcast %cst_99 : f32 to vector<8x128xf32>
    %296 = arith.subf %295, %294 : vector<8x128xf32>
    %cst_100 = arith.constant 0.000000e+00 : f32
    %297 = vector.broadcast %cst_100 : f32 to vector<8x128xf32>
    %298 = arith.maximumf %296, %297 : vector<8x128xf32>
    %299 = vector.extract_strided_slice %11 {offsets = [0, 15], sizes = [1, 1], strides = [1, 1]} : vector<1x33xf32> to vector<1x1xf32>
    %300 = vector.broadcast %299 : vector<1x1xf32> to vector<8x128xf32>
    %301 = arith.mulf %298, %300 : vector<8x128xf32>
    %302 = arith.addf %291, %301 : vector<8x128xf32>
    %cst_101 = arith.constant 1.600000e+01 : f32
    %303 = vector.broadcast %cst_101 : f32 to vector<8x128xf32>
    %304 = arith.subf %127, %303 : vector<8x128xf32>
    %305 = math.absf %304 : vector<8x128xf32>
    %cst_102 = arith.constant 1.000000e+00 : f32
    %306 = vector.broadcast %cst_102 : f32 to vector<8x128xf32>
    %307 = arith.subf %306, %305 : vector<8x128xf32>
    %cst_103 = arith.constant 0.000000e+00 : f32
    %308 = vector.broadcast %cst_103 : f32 to vector<8x128xf32>
    %309 = arith.maximumf %307, %308 : vector<8x128xf32>
    %310 = vector.extract_strided_slice %11 {offsets = [0, 16], sizes = [1, 1], strides = [1, 1]} : vector<1x33xf32> to vector<1x1xf32>
    %311 = vector.broadcast %310 : vector<1x1xf32> to vector<8x128xf32>
    %312 = arith.mulf %309, %311 : vector<8x128xf32>
    %313 = arith.addf %302, %312 : vector<8x128xf32>
    %cst_104 = arith.constant 1.700000e+01 : f32
    %314 = vector.broadcast %cst_104 : f32 to vector<8x128xf32>
    %315 = arith.subf %127, %314 : vector<8x128xf32>
    %316 = math.absf %315 : vector<8x128xf32>
    %cst_105 = arith.constant 1.000000e+00 : f32
    %317 = vector.broadcast %cst_105 : f32 to vector<8x128xf32>
    %318 = arith.subf %317, %316 : vector<8x128xf32>
    %cst_106 = arith.constant 0.000000e+00 : f32
    %319 = vector.broadcast %cst_106 : f32 to vector<8x128xf32>
    %320 = arith.maximumf %318, %319 : vector<8x128xf32>
    %321 = vector.extract_strided_slice %11 {offsets = [0, 17], sizes = [1, 1], strides = [1, 1]} : vector<1x33xf32> to vector<1x1xf32>
    %322 = vector.broadcast %321 : vector<1x1xf32> to vector<8x128xf32>
    %323 = arith.mulf %320, %322 : vector<8x128xf32>
    %324 = arith.addf %313, %323 : vector<8x128xf32>
    %cst_107 = arith.constant 1.800000e+01 : f32
    %325 = vector.broadcast %cst_107 : f32 to vector<8x128xf32>
    %326 = arith.subf %127, %325 : vector<8x128xf32>
    %327 = math.absf %326 : vector<8x128xf32>
    %cst_108 = arith.constant 1.000000e+00 : f32
    %328 = vector.broadcast %cst_108 : f32 to vector<8x128xf32>
    %329 = arith.subf %328, %327 : vector<8x128xf32>
    %cst_109 = arith.constant 0.000000e+00 : f32
    %330 = vector.broadcast %cst_109 : f32 to vector<8x128xf32>
    %331 = arith.maximumf %329, %330 : vector<8x128xf32>
    %332 = vector.extract_strided_slice %11 {offsets = [0, 18], sizes = [1, 1], strides = [1, 1]} : vector<1x33xf32> to vector<1x1xf32>
    %333 = vector.broadcast %332 : vector<1x1xf32> to vector<8x128xf32>
    %334 = arith.mulf %331, %333 : vector<8x128xf32>
    %335 = arith.addf %324, %334 : vector<8x128xf32>
    %cst_110 = arith.constant 1.900000e+01 : f32
    %336 = vector.broadcast %cst_110 : f32 to vector<8x128xf32>
    %337 = arith.subf %127, %336 : vector<8x128xf32>
    %338 = math.absf %337 : vector<8x128xf32>
    %cst_111 = arith.constant 1.000000e+00 : f32
    %339 = vector.broadcast %cst_111 : f32 to vector<8x128xf32>
    %340 = arith.subf %339, %338 : vector<8x128xf32>
    %cst_112 = arith.constant 0.000000e+00 : f32
    %341 = vector.broadcast %cst_112 : f32 to vector<8x128xf32>
    %342 = arith.maximumf %340, %341 : vector<8x128xf32>
    %343 = vector.extract_strided_slice %11 {offsets = [0, 19], sizes = [1, 1], strides = [1, 1]} : vector<1x33xf32> to vector<1x1xf32>
    %344 = vector.broadcast %343 : vector<1x1xf32> to vector<8x128xf32>
    %345 = arith.mulf %342, %344 : vector<8x128xf32>
    %346 = arith.addf %335, %345 : vector<8x128xf32>
    %cst_113 = arith.constant 2.000000e+01 : f32
    %347 = vector.broadcast %cst_113 : f32 to vector<8x128xf32>
    %348 = arith.subf %127, %347 : vector<8x128xf32>
    %349 = math.absf %348 : vector<8x128xf32>
    %cst_114 = arith.constant 1.000000e+00 : f32
    %350 = vector.broadcast %cst_114 : f32 to vector<8x128xf32>
    %351 = arith.subf %350, %349 : vector<8x128xf32>
    %cst_115 = arith.constant 0.000000e+00 : f32
    %352 = vector.broadcast %cst_115 : f32 to vector<8x128xf32>
    %353 = arith.maximumf %351, %352 : vector<8x128xf32>
    %354 = vector.extract_strided_slice %11 {offsets = [0, 20], sizes = [1, 1], strides = [1, 1]} : vector<1x33xf32> to vector<1x1xf32>
    %355 = vector.broadcast %354 : vector<1x1xf32> to vector<8x128xf32>
    %356 = arith.mulf %353, %355 : vector<8x128xf32>
    %357 = arith.addf %346, %356 : vector<8x128xf32>
    %cst_116 = arith.constant 2.100000e+01 : f32
    %358 = vector.broadcast %cst_116 : f32 to vector<8x128xf32>
    %359 = arith.subf %127, %358 : vector<8x128xf32>
    %360 = math.absf %359 : vector<8x128xf32>
    %cst_117 = arith.constant 1.000000e+00 : f32
    %361 = vector.broadcast %cst_117 : f32 to vector<8x128xf32>
    %362 = arith.subf %361, %360 : vector<8x128xf32>
    %cst_118 = arith.constant 0.000000e+00 : f32
    %363 = vector.broadcast %cst_118 : f32 to vector<8x128xf32>
    %364 = arith.maximumf %362, %363 : vector<8x128xf32>
    %365 = vector.extract_strided_slice %11 {offsets = [0, 21], sizes = [1, 1], strides = [1, 1]} : vector<1x33xf32> to vector<1x1xf32>
    %366 = vector.broadcast %365 : vector<1x1xf32> to vector<8x128xf32>
    %367 = arith.mulf %364, %366 : vector<8x128xf32>
    %368 = arith.addf %357, %367 : vector<8x128xf32>
    %cst_119 = arith.constant 2.200000e+01 : f32
    %369 = vector.broadcast %cst_119 : f32 to vector<8x128xf32>
    %370 = arith.subf %127, %369 : vector<8x128xf32>
    %371 = math.absf %370 : vector<8x128xf32>
    %cst_120 = arith.constant 1.000000e+00 : f32
    %372 = vector.broadcast %cst_120 : f32 to vector<8x128xf32>
    %373 = arith.subf %372, %371 : vector<8x128xf32>
    %cst_121 = arith.constant 0.000000e+00 : f32
    %374 = vector.broadcast %cst_121 : f32 to vector<8x128xf32>
    %375 = arith.maximumf %373, %374 : vector<8x128xf32>
    %376 = vector.extract_strided_slice %11 {offsets = [0, 22], sizes = [1, 1], strides = [1, 1]} : vector<1x33xf32> to vector<1x1xf32>
    %377 = vector.broadcast %376 : vector<1x1xf32> to vector<8x128xf32>
    %378 = arith.mulf %375, %377 : vector<8x128xf32>
    %379 = arith.addf %368, %378 : vector<8x128xf32>
    %cst_122 = arith.constant 2.300000e+01 : f32
    %380 = vector.broadcast %cst_122 : f32 to vector<8x128xf32>
    %381 = arith.subf %127, %380 : vector<8x128xf32>
    %382 = math.absf %381 : vector<8x128xf32>
    %cst_123 = arith.constant 1.000000e+00 : f32
    %383 = vector.broadcast %cst_123 : f32 to vector<8x128xf32>
    %384 = arith.subf %383, %382 : vector<8x128xf32>
    %cst_124 = arith.constant 0.000000e+00 : f32
    %385 = vector.broadcast %cst_124 : f32 to vector<8x128xf32>
    %386 = arith.maximumf %384, %385 : vector<8x128xf32>
    %387 = vector.extract_strided_slice %11 {offsets = [0, 23], sizes = [1, 1], strides = [1, 1]} : vector<1x33xf32> to vector<1x1xf32>
    %388 = vector.broadcast %387 : vector<1x1xf32> to vector<8x128xf32>
    %389 = arith.mulf %386, %388 : vector<8x128xf32>
    %390 = arith.addf %379, %389 : vector<8x128xf32>
    %cst_125 = arith.constant 2.400000e+01 : f32
    %391 = vector.broadcast %cst_125 : f32 to vector<8x128xf32>
    %392 = arith.subf %127, %391 : vector<8x128xf32>
    %393 = math.absf %392 : vector<8x128xf32>
    %cst_126 = arith.constant 1.000000e+00 : f32
    %394 = vector.broadcast %cst_126 : f32 to vector<8x128xf32>
    %395 = arith.subf %394, %393 : vector<8x128xf32>
    %cst_127 = arith.constant 0.000000e+00 : f32
    %396 = vector.broadcast %cst_127 : f32 to vector<8x128xf32>
    %397 = arith.maximumf %395, %396 : vector<8x128xf32>
    %398 = vector.extract_strided_slice %11 {offsets = [0, 24], sizes = [1, 1], strides = [1, 1]} : vector<1x33xf32> to vector<1x1xf32>
    %399 = vector.broadcast %398 : vector<1x1xf32> to vector<8x128xf32>
    %400 = arith.mulf %397, %399 : vector<8x128xf32>
    %401 = arith.addf %390, %400 : vector<8x128xf32>
    %cst_128 = arith.constant 2.500000e+01 : f32
    %402 = vector.broadcast %cst_128 : f32 to vector<8x128xf32>
    %403 = arith.subf %127, %402 : vector<8x128xf32>
    %404 = math.absf %403 : vector<8x128xf32>
    %cst_129 = arith.constant 1.000000e+00 : f32
    %405 = vector.broadcast %cst_129 : f32 to vector<8x128xf32>
    %406 = arith.subf %405, %404 : vector<8x128xf32>
    %cst_130 = arith.constant 0.000000e+00 : f32
    %407 = vector.broadcast %cst_130 : f32 to vector<8x128xf32>
    %408 = arith.maximumf %406, %407 : vector<8x128xf32>
    %409 = vector.extract_strided_slice %11 {offsets = [0, 25], sizes = [1, 1], strides = [1, 1]} : vector<1x33xf32> to vector<1x1xf32>
    %410 = vector.broadcast %409 : vector<1x1xf32> to vector<8x128xf32>
    %411 = arith.mulf %408, %410 : vector<8x128xf32>
    %412 = arith.addf %401, %411 : vector<8x128xf32>
    %cst_131 = arith.constant 2.600000e+01 : f32
    %413 = vector.broadcast %cst_131 : f32 to vector<8x128xf32>
    %414 = arith.subf %127, %413 : vector<8x128xf32>
    %415 = math.absf %414 : vector<8x128xf32>
    %cst_132 = arith.constant 1.000000e+00 : f32
    %416 = vector.broadcast %cst_132 : f32 to vector<8x128xf32>
    %417 = arith.subf %416, %415 : vector<8x128xf32>
    %cst_133 = arith.constant 0.000000e+00 : f32
    %418 = vector.broadcast %cst_133 : f32 to vector<8x128xf32>
    %419 = arith.maximumf %417, %418 : vector<8x128xf32>
    %420 = vector.extract_strided_slice %11 {offsets = [0, 26], sizes = [1, 1], strides = [1, 1]} : vector<1x33xf32> to vector<1x1xf32>
    %421 = vector.broadcast %420 : vector<1x1xf32> to vector<8x128xf32>
    %422 = arith.mulf %419, %421 : vector<8x128xf32>
    %423 = arith.addf %412, %422 : vector<8x128xf32>
    %cst_134 = arith.constant 2.700000e+01 : f32
    %424 = vector.broadcast %cst_134 : f32 to vector<8x128xf32>
    %425 = arith.subf %127, %424 : vector<8x128xf32>
    %426 = math.absf %425 : vector<8x128xf32>
    %cst_135 = arith.constant 1.000000e+00 : f32
    %427 = vector.broadcast %cst_135 : f32 to vector<8x128xf32>
    %428 = arith.subf %427, %426 : vector<8x128xf32>
    %cst_136 = arith.constant 0.000000e+00 : f32
    %429 = vector.broadcast %cst_136 : f32 to vector<8x128xf32>
    %430 = arith.maximumf %428, %429 : vector<8x128xf32>
    %431 = vector.extract_strided_slice %11 {offsets = [0, 27], sizes = [1, 1], strides = [1, 1]} : vector<1x33xf32> to vector<1x1xf32>
    %432 = vector.broadcast %431 : vector<1x1xf32> to vector<8x128xf32>
    %433 = arith.mulf %430, %432 : vector<8x128xf32>
    %434 = arith.addf %423, %433 : vector<8x128xf32>
    %cst_137 = arith.constant 2.800000e+01 : f32
    %435 = vector.broadcast %cst_137 : f32 to vector<8x128xf32>
    %436 = arith.subf %127, %435 : vector<8x128xf32>
    %437 = math.absf %436 : vector<8x128xf32>
    %cst_138 = arith.constant 1.000000e+00 : f32
    %438 = vector.broadcast %cst_138 : f32 to vector<8x128xf32>
    %439 = arith.subf %438, %437 : vector<8x128xf32>
    %cst_139 = arith.constant 0.000000e+00 : f32
    %440 = vector.broadcast %cst_139 : f32 to vector<8x128xf32>
    %441 = arith.maximumf %439, %440 : vector<8x128xf32>
    %442 = vector.extract_strided_slice %11 {offsets = [0, 28], sizes = [1, 1], strides = [1, 1]} : vector<1x33xf32> to vector<1x1xf32>
    %443 = vector.broadcast %442 : vector<1x1xf32> to vector<8x128xf32>
    %444 = arith.mulf %441, %443 : vector<8x128xf32>
    %445 = arith.addf %434, %444 : vector<8x128xf32>
    %cst_140 = arith.constant 2.900000e+01 : f32
    %446 = vector.broadcast %cst_140 : f32 to vector<8x128xf32>
    %447 = arith.subf %127, %446 : vector<8x128xf32>
    %448 = math.absf %447 : vector<8x128xf32>
    %cst_141 = arith.constant 1.000000e+00 : f32
    %449 = vector.broadcast %cst_141 : f32 to vector<8x128xf32>
    %450 = arith.subf %449, %448 : vector<8x128xf32>
    %cst_142 = arith.constant 0.000000e+00 : f32
    %451 = vector.broadcast %cst_142 : f32 to vector<8x128xf32>
    %452 = arith.maximumf %450, %451 : vector<8x128xf32>
    %453 = vector.extract_strided_slice %11 {offsets = [0, 29], sizes = [1, 1], strides = [1, 1]} : vector<1x33xf32> to vector<1x1xf32>
    %454 = vector.broadcast %453 : vector<1x1xf32> to vector<8x128xf32>
    %455 = arith.mulf %452, %454 : vector<8x128xf32>
    %456 = arith.addf %445, %455 : vector<8x128xf32>
    %cst_143 = arith.constant 3.000000e+01 : f32
    %457 = vector.broadcast %cst_143 : f32 to vector<8x128xf32>
    %458 = arith.subf %127, %457 : vector<8x128xf32>
    %459 = math.absf %458 : vector<8x128xf32>
    %cst_144 = arith.constant 1.000000e+00 : f32
    %460 = vector.broadcast %cst_144 : f32 to vector<8x128xf32>
    %461 = arith.subf %460, %459 : vector<8x128xf32>
    %cst_145 = arith.constant 0.000000e+00 : f32
    %462 = vector.broadcast %cst_145 : f32 to vector<8x128xf32>
    %463 = arith.maximumf %461, %462 : vector<8x128xf32>
    %464 = vector.extract_strided_slice %11 {offsets = [0, 30], sizes = [1, 1], strides = [1, 1]} : vector<1x33xf32> to vector<1x1xf32>
    %465 = vector.broadcast %464 : vector<1x1xf32> to vector<8x128xf32>
    %466 = arith.mulf %463, %465 : vector<8x128xf32>
    %467 = arith.addf %456, %466 : vector<8x128xf32>
    %cst_146 = arith.constant 3.100000e+01 : f32
    %468 = vector.broadcast %cst_146 : f32 to vector<8x128xf32>
    %469 = arith.subf %127, %468 : vector<8x128xf32>
    %470 = math.absf %469 : vector<8x128xf32>
    %cst_147 = arith.constant 1.000000e+00 : f32
    %471 = vector.broadcast %cst_147 : f32 to vector<8x128xf32>
    %472 = arith.subf %471, %470 : vector<8x128xf32>
    %cst_148 = arith.constant 0.000000e+00 : f32
    %473 = vector.broadcast %cst_148 : f32 to vector<8x128xf32>
    %474 = arith.maximumf %472, %473 : vector<8x128xf32>
    %475 = vector.extract_strided_slice %11 {offsets = [0, 31], sizes = [1, 1], strides = [1, 1]} : vector<1x33xf32> to vector<1x1xf32>
    %476 = vector.broadcast %475 : vector<1x1xf32> to vector<8x128xf32>
    %477 = arith.mulf %474, %476 : vector<8x128xf32>
    %478 = arith.addf %467, %477 : vector<8x128xf32>
    %cst_149 = arith.constant 3.200000e+01 : f32
    %479 = vector.broadcast %cst_149 : f32 to vector<8x128xf32>
    %480 = arith.subf %127, %479 : vector<8x128xf32>
    %481 = math.absf %480 : vector<8x128xf32>
    %cst_150 = arith.constant 1.000000e+00 : f32
    %482 = vector.broadcast %cst_150 : f32 to vector<8x128xf32>
    %483 = arith.subf %482, %481 : vector<8x128xf32>
    %cst_151 = arith.constant 0.000000e+00 : f32
    %484 = vector.broadcast %cst_151 : f32 to vector<8x128xf32>
    %485 = arith.maximumf %483, %484 : vector<8x128xf32>
    %486 = vector.extract_strided_slice %11 {offsets = [0, 32], sizes = [1, 1], strides = [1, 1]} : vector<1x33xf32> to vector<1x1xf32>
    %487 = vector.broadcast %486 : vector<1x1xf32> to vector<8x128xf32>
    %488 = arith.mulf %485, %487 : vector<8x128xf32>
    %489 = arith.addf %478, %488 : vector<8x128xf32>
    %490 = vector.broadcast %57 : vector<1x128xf32> to vector<8x128xf32>
    %491 = arith.mulf %489, %490 : vector<8x128xf32>
    %cst_152 = arith.constant dense<0.000000e+00> : vector<8xf32>
    %492 = vector.multi_reduction <add>, %491, %cst_152 [1] : vector<8x128xf32> to vector<8xf32>
    %493 = vector.shape_cast %492 : vector<8xf32> to vector<1x8xf32>
    %494 = vector.broadcast %61 : vector<1x128xf32> to vector<8x128xf32>
    %495 = arith.mulf %489, %494 : vector<8x128xf32>
    %cst_153 = arith.constant dense<0.000000e+00> : vector<8xf32>
    %496 = vector.multi_reduction <add>, %495, %cst_153 [1] : vector<8x128xf32> to vector<8xf32>
    %497 = vector.shape_cast %496 : vector<8xf32> to vector<1x8xf32>
    %498 = arith.mulf %62, %497 : vector<1x8xf32>
    %499 = vector.extract_strided_slice %113 {offsets = [0, 1], sizes = [8, 1], strides = [1, 1]} : vector<8x2xf32> to vector<8x1xf32>
    %500 = vector.broadcast %499 : vector<8x1xf32> to vector<8x128xf32>
    %501 = arith.addf %120, %500 : vector<8x128xf32>
    %cst_154 = arith.constant 0.000000e+00 : f32
    %cst_155 = arith.constant 3.200000e+01 : f32
    %502 = vector.broadcast %cst_154 : f32 to vector<8x128xf32>
    %503 = arith.maximumf %502, %501 : vector<8x128xf32>
    %504 = vector.broadcast %cst_155 : f32 to vector<8x128xf32>
    %505 = arith.minimumf %504, %503 : vector<8x128xf32>
    %cst_156 = arith.constant 0.000000e+00 : f32
    %506 = vector.broadcast %cst_156 : f32 to vector<8x128xf32>
    %507 = arith.subf %505, %506 : vector<8x128xf32>
    %508 = math.absf %507 : vector<8x128xf32>
    %cst_157 = arith.constant 1.000000e+00 : f32
    %509 = vector.broadcast %cst_157 : f32 to vector<8x128xf32>
    %510 = arith.subf %509, %508 : vector<8x128xf32>
    %cst_158 = arith.constant 0.000000e+00 : f32
    %511 = vector.broadcast %cst_158 : f32 to vector<8x128xf32>
    %512 = arith.maximumf %510, %511 : vector<8x128xf32>
    %513 = vector.extract_strided_slice %11 {offsets = [0, 0], sizes = [1, 1], strides = [1, 1]} : vector<1x33xf32> to vector<1x1xf32>
    %514 = vector.broadcast %513 : vector<1x1xf32> to vector<8x128xf32>
    %515 = arith.mulf %512, %514 : vector<8x128xf32>
    %cst_159 = arith.constant 1.000000e+00 : f32
    %516 = vector.broadcast %cst_159 : f32 to vector<8x128xf32>
    %517 = arith.subf %505, %516 : vector<8x128xf32>
    %518 = math.absf %517 : vector<8x128xf32>
    %cst_160 = arith.constant 1.000000e+00 : f32
    %519 = vector.broadcast %cst_160 : f32 to vector<8x128xf32>
    %520 = arith.subf %519, %518 : vector<8x128xf32>
    %cst_161 = arith.constant 0.000000e+00 : f32
    %521 = vector.broadcast %cst_161 : f32 to vector<8x128xf32>
    %522 = arith.maximumf %520, %521 : vector<8x128xf32>
    %523 = vector.extract_strided_slice %11 {offsets = [0, 1], sizes = [1, 1], strides = [1, 1]} : vector<1x33xf32> to vector<1x1xf32>
    %524 = vector.broadcast %523 : vector<1x1xf32> to vector<8x128xf32>
    %525 = arith.mulf %522, %524 : vector<8x128xf32>
    %526 = arith.addf %515, %525 : vector<8x128xf32>
    %cst_162 = arith.constant 2.000000e+00 : f32
    %527 = vector.broadcast %cst_162 : f32 to vector<8x128xf32>
    %528 = arith.subf %505, %527 : vector<8x128xf32>
    %529 = math.absf %528 : vector<8x128xf32>
    %cst_163 = arith.constant 1.000000e+00 : f32
    %530 = vector.broadcast %cst_163 : f32 to vector<8x128xf32>
    %531 = arith.subf %530, %529 : vector<8x128xf32>
    %cst_164 = arith.constant 0.000000e+00 : f32
    %532 = vector.broadcast %cst_164 : f32 to vector<8x128xf32>
    %533 = arith.maximumf %531, %532 : vector<8x128xf32>
    %534 = vector.extract_strided_slice %11 {offsets = [0, 2], sizes = [1, 1], strides = [1, 1]} : vector<1x33xf32> to vector<1x1xf32>
    %535 = vector.broadcast %534 : vector<1x1xf32> to vector<8x128xf32>
    %536 = arith.mulf %533, %535 : vector<8x128xf32>
    %537 = arith.addf %526, %536 : vector<8x128xf32>
    %cst_165 = arith.constant 3.000000e+00 : f32
    %538 = vector.broadcast %cst_165 : f32 to vector<8x128xf32>
    %539 = arith.subf %505, %538 : vector<8x128xf32>
    %540 = math.absf %539 : vector<8x128xf32>
    %cst_166 = arith.constant 1.000000e+00 : f32
    %541 = vector.broadcast %cst_166 : f32 to vector<8x128xf32>
    %542 = arith.subf %541, %540 : vector<8x128xf32>
    %cst_167 = arith.constant 0.000000e+00 : f32
    %543 = vector.broadcast %cst_167 : f32 to vector<8x128xf32>
    %544 = arith.maximumf %542, %543 : vector<8x128xf32>
    %545 = vector.extract_strided_slice %11 {offsets = [0, 3], sizes = [1, 1], strides = [1, 1]} : vector<1x33xf32> to vector<1x1xf32>
    %546 = vector.broadcast %545 : vector<1x1xf32> to vector<8x128xf32>
    %547 = arith.mulf %544, %546 : vector<8x128xf32>
    %548 = arith.addf %537, %547 : vector<8x128xf32>
    %cst_168 = arith.constant 4.000000e+00 : f32
    %549 = vector.broadcast %cst_168 : f32 to vector<8x128xf32>
    %550 = arith.subf %505, %549 : vector<8x128xf32>
    %551 = math.absf %550 : vector<8x128xf32>
    %cst_169 = arith.constant 1.000000e+00 : f32
    %552 = vector.broadcast %cst_169 : f32 to vector<8x128xf32>
    %553 = arith.subf %552, %551 : vector<8x128xf32>
    %cst_170 = arith.constant 0.000000e+00 : f32
    %554 = vector.broadcast %cst_170 : f32 to vector<8x128xf32>
    %555 = arith.maximumf %553, %554 : vector<8x128xf32>
    %556 = vector.extract_strided_slice %11 {offsets = [0, 4], sizes = [1, 1], strides = [1, 1]} : vector<1x33xf32> to vector<1x1xf32>
    %557 = vector.broadcast %556 : vector<1x1xf32> to vector<8x128xf32>
    %558 = arith.mulf %555, %557 : vector<8x128xf32>
    %559 = arith.addf %548, %558 : vector<8x128xf32>
    %cst_171 = arith.constant 5.000000e+00 : f32
    %560 = vector.broadcast %cst_171 : f32 to vector<8x128xf32>
    %561 = arith.subf %505, %560 : vector<8x128xf32>
    %562 = math.absf %561 : vector<8x128xf32>
    %cst_172 = arith.constant 1.000000e+00 : f32
    %563 = vector.broadcast %cst_172 : f32 to vector<8x128xf32>
    %564 = arith.subf %563, %562 : vector<8x128xf32>
    %cst_173 = arith.constant 0.000000e+00 : f32
    %565 = vector.broadcast %cst_173 : f32 to vector<8x128xf32>
    %566 = arith.maximumf %564, %565 : vector<8x128xf32>
    %567 = vector.extract_strided_slice %11 {offsets = [0, 5], sizes = [1, 1], strides = [1, 1]} : vector<1x33xf32> to vector<1x1xf32>
    %568 = vector.broadcast %567 : vector<1x1xf32> to vector<8x128xf32>
    %569 = arith.mulf %566, %568 : vector<8x128xf32>
    %570 = arith.addf %559, %569 : vector<8x128xf32>
    %cst_174 = arith.constant 6.000000e+00 : f32
    %571 = vector.broadcast %cst_174 : f32 to vector<8x128xf32>
    %572 = arith.subf %505, %571 : vector<8x128xf32>
    %573 = math.absf %572 : vector<8x128xf32>
    %cst_175 = arith.constant 1.000000e+00 : f32
    %574 = vector.broadcast %cst_175 : f32 to vector<8x128xf32>
    %575 = arith.subf %574, %573 : vector<8x128xf32>
    %cst_176 = arith.constant 0.000000e+00 : f32
    %576 = vector.broadcast %cst_176 : f32 to vector<8x128xf32>
    %577 = arith.maximumf %575, %576 : vector<8x128xf32>
    %578 = vector.extract_strided_slice %11 {offsets = [0, 6], sizes = [1, 1], strides = [1, 1]} : vector<1x33xf32> to vector<1x1xf32>
    %579 = vector.broadcast %578 : vector<1x1xf32> to vector<8x128xf32>
    %580 = arith.mulf %577, %579 : vector<8x128xf32>
    %581 = arith.addf %570, %580 : vector<8x128xf32>
    %cst_177 = arith.constant 7.000000e+00 : f32
    %582 = vector.broadcast %cst_177 : f32 to vector<8x128xf32>
    %583 = arith.subf %505, %582 : vector<8x128xf32>
    %584 = math.absf %583 : vector<8x128xf32>
    %cst_178 = arith.constant 1.000000e+00 : f32
    %585 = vector.broadcast %cst_178 : f32 to vector<8x128xf32>
    %586 = arith.subf %585, %584 : vector<8x128xf32>
    %cst_179 = arith.constant 0.000000e+00 : f32
    %587 = vector.broadcast %cst_179 : f32 to vector<8x128xf32>
    %588 = arith.maximumf %586, %587 : vector<8x128xf32>
    %589 = vector.extract_strided_slice %11 {offsets = [0, 7], sizes = [1, 1], strides = [1, 1]} : vector<1x33xf32> to vector<1x1xf32>
    %590 = vector.broadcast %589 : vector<1x1xf32> to vector<8x128xf32>
    %591 = arith.mulf %588, %590 : vector<8x128xf32>
    %592 = arith.addf %581, %591 : vector<8x128xf32>
    %cst_180 = arith.constant 8.000000e+00 : f32
    %593 = vector.broadcast %cst_180 : f32 to vector<8x128xf32>
    %594 = arith.subf %505, %593 : vector<8x128xf32>
    %595 = math.absf %594 : vector<8x128xf32>
    %cst_181 = arith.constant 1.000000e+00 : f32
    %596 = vector.broadcast %cst_181 : f32 to vector<8x128xf32>
    %597 = arith.subf %596, %595 : vector<8x128xf32>
    %cst_182 = arith.constant 0.000000e+00 : f32
    %598 = vector.broadcast %cst_182 : f32 to vector<8x128xf32>
    %599 = arith.maximumf %597, %598 : vector<8x128xf32>
    %600 = vector.extract_strided_slice %11 {offsets = [0, 8], sizes = [1, 1], strides = [1, 1]} : vector<1x33xf32> to vector<1x1xf32>
    %601 = vector.broadcast %600 : vector<1x1xf32> to vector<8x128xf32>
    %602 = arith.mulf %599, %601 : vector<8x128xf32>
    %603 = arith.addf %592, %602 : vector<8x128xf32>
    %cst_183 = arith.constant 9.000000e+00 : f32
    %604 = vector.broadcast %cst_183 : f32 to vector<8x128xf32>
    %605 = arith.subf %505, %604 : vector<8x128xf32>
    %606 = math.absf %605 : vector<8x128xf32>
    %cst_184 = arith.constant 1.000000e+00 : f32
    %607 = vector.broadcast %cst_184 : f32 to vector<8x128xf32>
    %608 = arith.subf %607, %606 : vector<8x128xf32>
    %cst_185 = arith.constant 0.000000e+00 : f32
    %609 = vector.broadcast %cst_185 : f32 to vector<8x128xf32>
    %610 = arith.maximumf %608, %609 : vector<8x128xf32>
    %611 = vector.extract_strided_slice %11 {offsets = [0, 9], sizes = [1, 1], strides = [1, 1]} : vector<1x33xf32> to vector<1x1xf32>
    %612 = vector.broadcast %611 : vector<1x1xf32> to vector<8x128xf32>
    %613 = arith.mulf %610, %612 : vector<8x128xf32>
    %614 = arith.addf %603, %613 : vector<8x128xf32>
    %cst_186 = arith.constant 1.000000e+01 : f32
    %615 = vector.broadcast %cst_186 : f32 to vector<8x128xf32>
    %616 = arith.subf %505, %615 : vector<8x128xf32>
    %617 = math.absf %616 : vector<8x128xf32>
    %cst_187 = arith.constant 1.000000e+00 : f32
    %618 = vector.broadcast %cst_187 : f32 to vector<8x128xf32>
    %619 = arith.subf %618, %617 : vector<8x128xf32>
    %cst_188 = arith.constant 0.000000e+00 : f32
    %620 = vector.broadcast %cst_188 : f32 to vector<8x128xf32>
    %621 = arith.maximumf %619, %620 : vector<8x128xf32>
    %622 = vector.extract_strided_slice %11 {offsets = [0, 10], sizes = [1, 1], strides = [1, 1]} : vector<1x33xf32> to vector<1x1xf32>
    %623 = vector.broadcast %622 : vector<1x1xf32> to vector<8x128xf32>
    %624 = arith.mulf %621, %623 : vector<8x128xf32>
    %625 = arith.addf %614, %624 : vector<8x128xf32>
    %cst_189 = arith.constant 1.100000e+01 : f32
    %626 = vector.broadcast %cst_189 : f32 to vector<8x128xf32>
    %627 = arith.subf %505, %626 : vector<8x128xf32>
    %628 = math.absf %627 : vector<8x128xf32>
    %cst_190 = arith.constant 1.000000e+00 : f32
    %629 = vector.broadcast %cst_190 : f32 to vector<8x128xf32>
    %630 = arith.subf %629, %628 : vector<8x128xf32>
    %cst_191 = arith.constant 0.000000e+00 : f32
    %631 = vector.broadcast %cst_191 : f32 to vector<8x128xf32>
    %632 = arith.maximumf %630, %631 : vector<8x128xf32>
    %633 = vector.extract_strided_slice %11 {offsets = [0, 11], sizes = [1, 1], strides = [1, 1]} : vector<1x33xf32> to vector<1x1xf32>
    %634 = vector.broadcast %633 : vector<1x1xf32> to vector<8x128xf32>
    %635 = arith.mulf %632, %634 : vector<8x128xf32>
    %636 = arith.addf %625, %635 : vector<8x128xf32>
    %cst_192 = arith.constant 1.200000e+01 : f32
    %637 = vector.broadcast %cst_192 : f32 to vector<8x128xf32>
    %638 = arith.subf %505, %637 : vector<8x128xf32>
    %639 = math.absf %638 : vector<8x128xf32>
    %cst_193 = arith.constant 1.000000e+00 : f32
    %640 = vector.broadcast %cst_193 : f32 to vector<8x128xf32>
    %641 = arith.subf %640, %639 : vector<8x128xf32>
    %cst_194 = arith.constant 0.000000e+00 : f32
    %642 = vector.broadcast %cst_194 : f32 to vector<8x128xf32>
    %643 = arith.maximumf %641, %642 : vector<8x128xf32>
    %644 = vector.extract_strided_slice %11 {offsets = [0, 12], sizes = [1, 1], strides = [1, 1]} : vector<1x33xf32> to vector<1x1xf32>
    %645 = vector.broadcast %644 : vector<1x1xf32> to vector<8x128xf32>
    %646 = arith.mulf %643, %645 : vector<8x128xf32>
    %647 = arith.addf %636, %646 : vector<8x128xf32>
    %cst_195 = arith.constant 1.300000e+01 : f32
    %648 = vector.broadcast %cst_195 : f32 to vector<8x128xf32>
    %649 = arith.subf %505, %648 : vector<8x128xf32>
    %650 = math.absf %649 : vector<8x128xf32>
    %cst_196 = arith.constant 1.000000e+00 : f32
    %651 = vector.broadcast %cst_196 : f32 to vector<8x128xf32>
    %652 = arith.subf %651, %650 : vector<8x128xf32>
    %cst_197 = arith.constant 0.000000e+00 : f32
    %653 = vector.broadcast %cst_197 : f32 to vector<8x128xf32>
    %654 = arith.maximumf %652, %653 : vector<8x128xf32>
    %655 = vector.extract_strided_slice %11 {offsets = [0, 13], sizes = [1, 1], strides = [1, 1]} : vector<1x33xf32> to vector<1x1xf32>
    %656 = vector.broadcast %655 : vector<1x1xf32> to vector<8x128xf32>
    %657 = arith.mulf %654, %656 : vector<8x128xf32>
    %658 = arith.addf %647, %657 : vector<8x128xf32>
    %cst_198 = arith.constant 1.400000e+01 : f32
    %659 = vector.broadcast %cst_198 : f32 to vector<8x128xf32>
    %660 = arith.subf %505, %659 : vector<8x128xf32>
    %661 = math.absf %660 : vector<8x128xf32>
    %cst_199 = arith.constant 1.000000e+00 : f32
    %662 = vector.broadcast %cst_199 : f32 to vector<8x128xf32>
    %663 = arith.subf %662, %661 : vector<8x128xf32>
    %cst_200 = arith.constant 0.000000e+00 : f32
    %664 = vector.broadcast %cst_200 : f32 to vector<8x128xf32>
    %665 = arith.maximumf %663, %664 : vector<8x128xf32>
    %666 = vector.extract_strided_slice %11 {offsets = [0, 14], sizes = [1, 1], strides = [1, 1]} : vector<1x33xf32> to vector<1x1xf32>
    %667 = vector.broadcast %666 : vector<1x1xf32> to vector<8x128xf32>
    %668 = arith.mulf %665, %667 : vector<8x128xf32>
    %669 = arith.addf %658, %668 : vector<8x128xf32>
    %cst_201 = arith.constant 1.500000e+01 : f32
    %670 = vector.broadcast %cst_201 : f32 to vector<8x128xf32>
    %671 = arith.subf %505, %670 : vector<8x128xf32>
    %672 = math.absf %671 : vector<8x128xf32>
    %cst_202 = arith.constant 1.000000e+00 : f32
    %673 = vector.broadcast %cst_202 : f32 to vector<8x128xf32>
    %674 = arith.subf %673, %672 : vector<8x128xf32>
    %cst_203 = arith.constant 0.000000e+00 : f32
    %675 = vector.broadcast %cst_203 : f32 to vector<8x128xf32>
    %676 = arith.maximumf %674, %675 : vector<8x128xf32>
    %677 = vector.extract_strided_slice %11 {offsets = [0, 15], sizes = [1, 1], strides = [1, 1]} : vector<1x33xf32> to vector<1x1xf32>
    %678 = vector.broadcast %677 : vector<1x1xf32> to vector<8x128xf32>
    %679 = arith.mulf %676, %678 : vector<8x128xf32>
    %680 = arith.addf %669, %679 : vector<8x128xf32>
    %cst_204 = arith.constant 1.600000e+01 : f32
    %681 = vector.broadcast %cst_204 : f32 to vector<8x128xf32>
    %682 = arith.subf %505, %681 : vector<8x128xf32>
    %683 = math.absf %682 : vector<8x128xf32>
    %cst_205 = arith.constant 1.000000e+00 : f32
    %684 = vector.broadcast %cst_205 : f32 to vector<8x128xf32>
    %685 = arith.subf %684, %683 : vector<8x128xf32>
    %cst_206 = arith.constant 0.000000e+00 : f32
    %686 = vector.broadcast %cst_206 : f32 to vector<8x128xf32>
    %687 = arith.maximumf %685, %686 : vector<8x128xf32>
    %688 = vector.extract_strided_slice %11 {offsets = [0, 16], sizes = [1, 1], strides = [1, 1]} : vector<1x33xf32> to vector<1x1xf32>
    %689 = vector.broadcast %688 : vector<1x1xf32> to vector<8x128xf32>
    %690 = arith.mulf %687, %689 : vector<8x128xf32>
    %691 = arith.addf %680, %690 : vector<8x128xf32>
    %cst_207 = arith.constant 1.700000e+01 : f32
    %692 = vector.broadcast %cst_207 : f32 to vector<8x128xf32>
    %693 = arith.subf %505, %692 : vector<8x128xf32>
    %694 = math.absf %693 : vector<8x128xf32>
    %cst_208 = arith.constant 1.000000e+00 : f32
    %695 = vector.broadcast %cst_208 : f32 to vector<8x128xf32>
    %696 = arith.subf %695, %694 : vector<8x128xf32>
    %cst_209 = arith.constant 0.000000e+00 : f32
    %697 = vector.broadcast %cst_209 : f32 to vector<8x128xf32>
    %698 = arith.maximumf %696, %697 : vector<8x128xf32>
    %699 = vector.extract_strided_slice %11 {offsets = [0, 17], sizes = [1, 1], strides = [1, 1]} : vector<1x33xf32> to vector<1x1xf32>
    %700 = vector.broadcast %699 : vector<1x1xf32> to vector<8x128xf32>
    %701 = arith.mulf %698, %700 : vector<8x128xf32>
    %702 = arith.addf %691, %701 : vector<8x128xf32>
    %cst_210 = arith.constant 1.800000e+01 : f32
    %703 = vector.broadcast %cst_210 : f32 to vector<8x128xf32>
    %704 = arith.subf %505, %703 : vector<8x128xf32>
    %705 = math.absf %704 : vector<8x128xf32>
    %cst_211 = arith.constant 1.000000e+00 : f32
    %706 = vector.broadcast %cst_211 : f32 to vector<8x128xf32>
    %707 = arith.subf %706, %705 : vector<8x128xf32>
    %cst_212 = arith.constant 0.000000e+00 : f32
    %708 = vector.broadcast %cst_212 : f32 to vector<8x128xf32>
    %709 = arith.maximumf %707, %708 : vector<8x128xf32>
    %710 = vector.extract_strided_slice %11 {offsets = [0, 18], sizes = [1, 1], strides = [1, 1]} : vector<1x33xf32> to vector<1x1xf32>
    %711 = vector.broadcast %710 : vector<1x1xf32> to vector<8x128xf32>
    %712 = arith.mulf %709, %711 : vector<8x128xf32>
    %713 = arith.addf %702, %712 : vector<8x128xf32>
    %cst_213 = arith.constant 1.900000e+01 : f32
    %714 = vector.broadcast %cst_213 : f32 to vector<8x128xf32>
    %715 = arith.subf %505, %714 : vector<8x128xf32>
    %716 = math.absf %715 : vector<8x128xf32>
    %cst_214 = arith.constant 1.000000e+00 : f32
    %717 = vector.broadcast %cst_214 : f32 to vector<8x128xf32>
    %718 = arith.subf %717, %716 : vector<8x128xf32>
    %cst_215 = arith.constant 0.000000e+00 : f32
    %719 = vector.broadcast %cst_215 : f32 to vector<8x128xf32>
    %720 = arith.maximumf %718, %719 : vector<8x128xf32>
    %721 = vector.extract_strided_slice %11 {offsets = [0, 19], sizes = [1, 1], strides = [1, 1]} : vector<1x33xf32> to vector<1x1xf32>
    %722 = vector.broadcast %721 : vector<1x1xf32> to vector<8x128xf32>
    %723 = arith.mulf %720, %722 : vector<8x128xf32>
    %724 = arith.addf %713, %723 : vector<8x128xf32>
    %cst_216 = arith.constant 2.000000e+01 : f32
    %725 = vector.broadcast %cst_216 : f32 to vector<8x128xf32>
    %726 = arith.subf %505, %725 : vector<8x128xf32>
    %727 = math.absf %726 : vector<8x128xf32>
    %cst_217 = arith.constant 1.000000e+00 : f32
    %728 = vector.broadcast %cst_217 : f32 to vector<8x128xf32>
    %729 = arith.subf %728, %727 : vector<8x128xf32>
    %cst_218 = arith.constant 0.000000e+00 : f32
    %730 = vector.broadcast %cst_218 : f32 to vector<8x128xf32>
    %731 = arith.maximumf %729, %730 : vector<8x128xf32>
    %732 = vector.extract_strided_slice %11 {offsets = [0, 20], sizes = [1, 1], strides = [1, 1]} : vector<1x33xf32> to vector<1x1xf32>
    %733 = vector.broadcast %732 : vector<1x1xf32> to vector<8x128xf32>
    %734 = arith.mulf %731, %733 : vector<8x128xf32>
    %735 = arith.addf %724, %734 : vector<8x128xf32>
    %cst_219 = arith.constant 2.100000e+01 : f32
    %736 = vector.broadcast %cst_219 : f32 to vector<8x128xf32>
    %737 = arith.subf %505, %736 : vector<8x128xf32>
    %738 = math.absf %737 : vector<8x128xf32>
    %cst_220 = arith.constant 1.000000e+00 : f32
    %739 = vector.broadcast %cst_220 : f32 to vector<8x128xf32>
    %740 = arith.subf %739, %738 : vector<8x128xf32>
    %cst_221 = arith.constant 0.000000e+00 : f32
    %741 = vector.broadcast %cst_221 : f32 to vector<8x128xf32>
    %742 = arith.maximumf %740, %741 : vector<8x128xf32>
    %743 = vector.extract_strided_slice %11 {offsets = [0, 21], sizes = [1, 1], strides = [1, 1]} : vector<1x33xf32> to vector<1x1xf32>
    %744 = vector.broadcast %743 : vector<1x1xf32> to vector<8x128xf32>
    %745 = arith.mulf %742, %744 : vector<8x128xf32>
    %746 = arith.addf %735, %745 : vector<8x128xf32>
    %cst_222 = arith.constant 2.200000e+01 : f32
    %747 = vector.broadcast %cst_222 : f32 to vector<8x128xf32>
    %748 = arith.subf %505, %747 : vector<8x128xf32>
    %749 = math.absf %748 : vector<8x128xf32>
    %cst_223 = arith.constant 1.000000e+00 : f32
    %750 = vector.broadcast %cst_223 : f32 to vector<8x128xf32>
    %751 = arith.subf %750, %749 : vector<8x128xf32>
    %cst_224 = arith.constant 0.000000e+00 : f32
    %752 = vector.broadcast %cst_224 : f32 to vector<8x128xf32>
    %753 = arith.maximumf %751, %752 : vector<8x128xf32>
    %754 = vector.extract_strided_slice %11 {offsets = [0, 22], sizes = [1, 1], strides = [1, 1]} : vector<1x33xf32> to vector<1x1xf32>
    %755 = vector.broadcast %754 : vector<1x1xf32> to vector<8x128xf32>
    %756 = arith.mulf %753, %755 : vector<8x128xf32>
    %757 = arith.addf %746, %756 : vector<8x128xf32>
    %cst_225 = arith.constant 2.300000e+01 : f32
    %758 = vector.broadcast %cst_225 : f32 to vector<8x128xf32>
    %759 = arith.subf %505, %758 : vector<8x128xf32>
    %760 = math.absf %759 : vector<8x128xf32>
    %cst_226 = arith.constant 1.000000e+00 : f32
    %761 = vector.broadcast %cst_226 : f32 to vector<8x128xf32>
    %762 = arith.subf %761, %760 : vector<8x128xf32>
    %cst_227 = arith.constant 0.000000e+00 : f32
    %763 = vector.broadcast %cst_227 : f32 to vector<8x128xf32>
    %764 = arith.maximumf %762, %763 : vector<8x128xf32>
    %765 = vector.extract_strided_slice %11 {offsets = [0, 23], sizes = [1, 1], strides = [1, 1]} : vector<1x33xf32> to vector<1x1xf32>
    %766 = vector.broadcast %765 : vector<1x1xf32> to vector<8x128xf32>
    %767 = arith.mulf %764, %766 : vector<8x128xf32>
    %768 = arith.addf %757, %767 : vector<8x128xf32>
    %cst_228 = arith.constant 2.400000e+01 : f32
    %769 = vector.broadcast %cst_228 : f32 to vector<8x128xf32>
    %770 = arith.subf %505, %769 : vector<8x128xf32>
    %771 = math.absf %770 : vector<8x128xf32>
    %cst_229 = arith.constant 1.000000e+00 : f32
    %772 = vector.broadcast %cst_229 : f32 to vector<8x128xf32>
    %773 = arith.subf %772, %771 : vector<8x128xf32>
    %cst_230 = arith.constant 0.000000e+00 : f32
    %774 = vector.broadcast %cst_230 : f32 to vector<8x128xf32>
    %775 = arith.maximumf %773, %774 : vector<8x128xf32>
    %776 = vector.extract_strided_slice %11 {offsets = [0, 24], sizes = [1, 1], strides = [1, 1]} : vector<1x33xf32> to vector<1x1xf32>
    %777 = vector.broadcast %776 : vector<1x1xf32> to vector<8x128xf32>
    %778 = arith.mulf %775, %777 : vector<8x128xf32>
    %779 = arith.addf %768, %778 : vector<8x128xf32>
    %cst_231 = arith.constant 2.500000e+01 : f32
    %780 = vector.broadcast %cst_231 : f32 to vector<8x128xf32>
    %781 = arith.subf %505, %780 : vector<8x128xf32>
    %782 = math.absf %781 : vector<8x128xf32>
    %cst_232 = arith.constant 1.000000e+00 : f32
    %783 = vector.broadcast %cst_232 : f32 to vector<8x128xf32>
    %784 = arith.subf %783, %782 : vector<8x128xf32>
    %cst_233 = arith.constant 0.000000e+00 : f32
    %785 = vector.broadcast %cst_233 : f32 to vector<8x128xf32>
    %786 = arith.maximumf %784, %785 : vector<8x128xf32>
    %787 = vector.extract_strided_slice %11 {offsets = [0, 25], sizes = [1, 1], strides = [1, 1]} : vector<1x33xf32> to vector<1x1xf32>
    %788 = vector.broadcast %787 : vector<1x1xf32> to vector<8x128xf32>
    %789 = arith.mulf %786, %788 : vector<8x128xf32>
    %790 = arith.addf %779, %789 : vector<8x128xf32>
    %cst_234 = arith.constant 2.600000e+01 : f32
    %791 = vector.broadcast %cst_234 : f32 to vector<8x128xf32>
    %792 = arith.subf %505, %791 : vector<8x128xf32>
    %793 = math.absf %792 : vector<8x128xf32>
    %cst_235 = arith.constant 1.000000e+00 : f32
    %794 = vector.broadcast %cst_235 : f32 to vector<8x128xf32>
    %795 = arith.subf %794, %793 : vector<8x128xf32>
    %cst_236 = arith.constant 0.000000e+00 : f32
    %796 = vector.broadcast %cst_236 : f32 to vector<8x128xf32>
    %797 = arith.maximumf %795, %796 : vector<8x128xf32>
    %798 = vector.extract_strided_slice %11 {offsets = [0, 26], sizes = [1, 1], strides = [1, 1]} : vector<1x33xf32> to vector<1x1xf32>
    %799 = vector.broadcast %798 : vector<1x1xf32> to vector<8x128xf32>
    %800 = arith.mulf %797, %799 : vector<8x128xf32>
    %801 = arith.addf %790, %800 : vector<8x128xf32>
    %cst_237 = arith.constant 2.700000e+01 : f32
    %802 = vector.broadcast %cst_237 : f32 to vector<8x128xf32>
    %803 = arith.subf %505, %802 : vector<8x128xf32>
    %804 = math.absf %803 : vector<8x128xf32>
    %cst_238 = arith.constant 1.000000e+00 : f32
    %805 = vector.broadcast %cst_238 : f32 to vector<8x128xf32>
    %806 = arith.subf %805, %804 : vector<8x128xf32>
    %cst_239 = arith.constant 0.000000e+00 : f32
    %807 = vector.broadcast %cst_239 : f32 to vector<8x128xf32>
    %808 = arith.maximumf %806, %807 : vector<8x128xf32>
    %809 = vector.extract_strided_slice %11 {offsets = [0, 27], sizes = [1, 1], strides = [1, 1]} : vector<1x33xf32> to vector<1x1xf32>
    %810 = vector.broadcast %809 : vector<1x1xf32> to vector<8x128xf32>
    %811 = arith.mulf %808, %810 : vector<8x128xf32>
    %812 = arith.addf %801, %811 : vector<8x128xf32>
    %cst_240 = arith.constant 2.800000e+01 : f32
    %813 = vector.broadcast %cst_240 : f32 to vector<8x128xf32>
    %814 = arith.subf %505, %813 : vector<8x128xf32>
    %815 = math.absf %814 : vector<8x128xf32>
    %cst_241 = arith.constant 1.000000e+00 : f32
    %816 = vector.broadcast %cst_241 : f32 to vector<8x128xf32>
    %817 = arith.subf %816, %815 : vector<8x128xf32>
    %cst_242 = arith.constant 0.000000e+00 : f32
    %818 = vector.broadcast %cst_242 : f32 to vector<8x128xf32>
    %819 = arith.maximumf %817, %818 : vector<8x128xf32>
    %820 = vector.extract_strided_slice %11 {offsets = [0, 28], sizes = [1, 1], strides = [1, 1]} : vector<1x33xf32> to vector<1x1xf32>
    %821 = vector.broadcast %820 : vector<1x1xf32> to vector<8x128xf32>
    %822 = arith.mulf %819, %821 : vector<8x128xf32>
    %823 = arith.addf %812, %822 : vector<8x128xf32>
    %cst_243 = arith.constant 2.900000e+01 : f32
    %824 = vector.broadcast %cst_243 : f32 to vector<8x128xf32>
    %825 = arith.subf %505, %824 : vector<8x128xf32>
    %826 = math.absf %825 : vector<8x128xf32>
    %cst_244 = arith.constant 1.000000e+00 : f32
    %827 = vector.broadcast %cst_244 : f32 to vector<8x128xf32>
    %828 = arith.subf %827, %826 : vector<8x128xf32>
    %cst_245 = arith.constant 0.000000e+00 : f32
    %829 = vector.broadcast %cst_245 : f32 to vector<8x128xf32>
    %830 = arith.maximumf %828, %829 : vector<8x128xf32>
    %831 = vector.extract_strided_slice %11 {offsets = [0, 29], sizes = [1, 1], strides = [1, 1]} : vector<1x33xf32> to vector<1x1xf32>
    %832 = vector.broadcast %831 : vector<1x1xf32> to vector<8x128xf32>
    %833 = arith.mulf %830, %832 : vector<8x128xf32>
    %834 = arith.addf %823, %833 : vector<8x128xf32>
    %cst_246 = arith.constant 3.000000e+01 : f32
    %835 = vector.broadcast %cst_246 : f32 to vector<8x128xf32>
    %836 = arith.subf %505, %835 : vector<8x128xf32>
    %837 = math.absf %836 : vector<8x128xf32>
    %cst_247 = arith.constant 1.000000e+00 : f32
    %838 = vector.broadcast %cst_247 : f32 to vector<8x128xf32>
    %839 = arith.subf %838, %837 : vector<8x128xf32>
    %cst_248 = arith.constant 0.000000e+00 : f32
    %840 = vector.broadcast %cst_248 : f32 to vector<8x128xf32>
    %841 = arith.maximumf %839, %840 : vector<8x128xf32>
    %842 = vector.extract_strided_slice %11 {offsets = [0, 30], sizes = [1, 1], strides = [1, 1]} : vector<1x33xf32> to vector<1x1xf32>
    %843 = vector.broadcast %842 : vector<1x1xf32> to vector<8x128xf32>
    %844 = arith.mulf %841, %843 : vector<8x128xf32>
    %845 = arith.addf %834, %844 : vector<8x128xf32>
    %cst_249 = arith.constant 3.100000e+01 : f32
    %846 = vector.broadcast %cst_249 : f32 to vector<8x128xf32>
    %847 = arith.subf %505, %846 : vector<8x128xf32>
    %848 = math.absf %847 : vector<8x128xf32>
    %cst_250 = arith.constant 1.000000e+00 : f32
    %849 = vector.broadcast %cst_250 : f32 to vector<8x128xf32>
    %850 = arith.subf %849, %848 : vector<8x128xf32>
    %cst_251 = arith.constant 0.000000e+00 : f32
    %851 = vector.broadcast %cst_251 : f32 to vector<8x128xf32>
    %852 = arith.maximumf %850, %851 : vector<8x128xf32>
    %853 = vector.extract_strided_slice %11 {offsets = [0, 31], sizes = [1, 1], strides = [1, 1]} : vector<1x33xf32> to vector<1x1xf32>
    %854 = vector.broadcast %853 : vector<1x1xf32> to vector<8x128xf32>
    %855 = arith.mulf %852, %854 : vector<8x128xf32>
    %856 = arith.addf %845, %855 : vector<8x128xf32>
    %cst_252 = arith.constant 3.200000e+01 : f32
    %857 = vector.broadcast %cst_252 : f32 to vector<8x128xf32>
    %858 = arith.subf %505, %857 : vector<8x128xf32>
    %859 = math.absf %858 : vector<8x128xf32>
    %cst_253 = arith.constant 1.000000e+00 : f32
    %860 = vector.broadcast %cst_253 : f32 to vector<8x128xf32>
    %861 = arith.subf %860, %859 : vector<8x128xf32>
    %cst_254 = arith.constant 0.000000e+00 : f32
    %862 = vector.broadcast %cst_254 : f32 to vector<8x128xf32>
    %863 = arith.maximumf %861, %862 : vector<8x128xf32>
    %864 = vector.extract_strided_slice %11 {offsets = [0, 32], sizes = [1, 1], strides = [1, 1]} : vector<1x33xf32> to vector<1x1xf32>
    %865 = vector.broadcast %864 : vector<1x1xf32> to vector<8x128xf32>
    %866 = arith.mulf %863, %865 : vector<8x128xf32>
    %867 = arith.addf %856, %866 : vector<8x128xf32>
    %868 = vector.broadcast %57 : vector<1x128xf32> to vector<8x128xf32>
    %869 = arith.mulf %867, %868 : vector<8x128xf32>
    %cst_255 = arith.constant dense<0.000000e+00> : vector<8xf32>
    %870 = vector.multi_reduction <add>, %869, %cst_255 [1] : vector<8x128xf32> to vector<8xf32>
    %871 = vector.shape_cast %870 : vector<8xf32> to vector<1x8xf32>
    %872 = vector.broadcast %61 : vector<1x128xf32> to vector<8x128xf32>
    %873 = arith.mulf %867, %872 : vector<8x128xf32>
    %cst_256 = arith.constant dense<0.000000e+00> : vector<8xf32>
    %874 = vector.multi_reduction <add>, %873, %cst_256 [1] : vector<8x128xf32> to vector<8xf32>
    %875 = vector.shape_cast %874 : vector<8xf32> to vector<1x8xf32>
    %876 = arith.mulf %62, %875 : vector<1x8xf32>
    %cst_257 = arith.constant 0.000000e+00 : f32
    %877 = vector.broadcast %cst_257 : f32 to vector<1x95xf32>
    %878 = tpu.concatenate %493, %498, %871, %876, %17, %877 in 1 : vector<1x8xf32>, vector<1x8xf32>, vector<1x8xf32>, vector<1x8xf32>, vector<1x1xf32>, vector<1x95xf32> -> vector<1x128xf32>
    %c0_258 = arith.constant 0 : index
    %c0_259 = arith.constant 0 : index
    %879 = vector.load %arg7[%c0_258, %c0_259] : memref<1x128xf32, #tpu.memory_space<vmem>>, vector<1x128xf32>
    tpu.vector_store %arg7[%c0_258, %c0_259], %878 {strides = array<i32>} : memref<1x128xf32, #tpu.memory_space<vmem>>, vector<1x128xf32>,
    return
  }
  func.func @transform_0(%arg0: i32) -> (i32, i32) {
    %c0_i32 = arith.constant 0 : i32
    %c0_i32_0 = arith.constant 0 : i32
    %c0_i32_1 = arith.constant 0 : i32
    return %c0_i32, %c0_i32_0 : i32, i32
  }
  func.func @transform_1(%arg0: i32) -> (i32, i32) {
    %c0_i32 = arith.constant 0 : i32
    %c0_i32_0 = arith.constant 0 : i32
    %c0_i32_1 = arith.constant 0 : i32
    return %c0_i32, %c0_i32_0 : i32, i32
  }
  func.func @transform_2(%arg0: i32) -> (i32, i32) {
    %c0_i32 = arith.constant 0 : i32
    %c0_i32_0 = arith.constant 0 : i32
    %c0_i32_1 = arith.constant 0 : i32
    return %c0_i32, %c0_i32_0 : i32, i32
  }
  func.func @transform_3(%arg0: i32) -> (i32, i32) {
    %c0_i32 = arith.constant 0 : i32
    %c0_i32_0 = arith.constant 0 : i32
    %c0_i32_1 = arith.constant 0 : i32
    return %c0_i32, %c0_i32_0 : i32, i32
  }
  func.func @transform_4(%arg0: i32) -> (i32, i32) {
    %c0_i32 = arith.constant 0 : i32
    %c0_i32_0 = arith.constant 0 : i32
    %c0_i32_1 = arith.constant 0 : i32
    return %c0_i32, %c0_i32_0 : i32, i32
  }
  func.func @transform_5(%arg0: i32) -> (i32, i32) {
    %c0_i32 = arith.constant 0 : i32
    %c0_i32_0 = arith.constant 0 : i32
    %c0_i32_1 = arith.constant 0 : i32
    return %c0_i32, %c0_i32_0 : i32, i32
  }
  func.func @transform_6(%arg0: i32) -> (i32, i32) {
    %c0_i32 = arith.constant 0 : i32
    %c0_i32_0 = arith.constant 0 : i32
    %c0_i32_1 = arith.constant 0 : i32
    return %c0_i32, %c0_i32_0 : i32, i32
  }
}

</mosaic_0001>

<bundles_post_ra>
// kernel: _fcn_forward.1
= control target key start
LH: loop header
LB: loop body
LE: loop exit
PB: predicated region body
PF: predicated region fallthrough
CT: control target
= control target key end

     0   :  { %vm26_vm0 = vcmask 64512   ;;  %v1324_v0 = vmov 0.0   ;;  %vm1325_vm1 = vmmov 0   ;;  %v1326_v4 = vmov 0.0|0.0   ;;  %s1329_s12 = smov 126   ;;  %s1331_s13 = smov 125   ;;  %s2091_s2 = inlined_call_operand.vmem [shape: f32[8,32], index: 2, kind: input, shape index: {}]   ;;  %s2092_s0 = inlined_call_operand.vmem [shape: f32[1,8], index: 0, kind: input, shape index: {}]   ;;  %s2093_s3 = inlined_call_operand.vmem [shape: f32[32,37], index: 3, kind: input, shape index: {}]   ;;  %s2094_s1 = inlined_call_operand.vmem [shape: f32[8,1], index: 1, kind: input, shape index: {}]   ;;  %s2095_s4 = inlined_call_operand.vmem [shape: f32[1,32], index: 4, kind: input, shape index: {}]   ;;  %s2096_s5 = inlined_call_operand.vmem [shape: f32[1,37], index: 5, kind: input, shape index: {}]   ;;  %s2097_s6 = inlined_call_operand.vmem [shape: f32[1,128], index: 6, kind: output, shape index: {}]  }
   0x1   :  { %1180 = vmatprep.subr.mxu0 %v1324_v0  ;;  %v24_v1 = vld [vmem:[%s2091_s2] sm:$0xff]  ;;  %1182 = vmatprep.mubr.msk.f32.mxu0 %vm1325_vm1, %v1324_v0  ;;  %v102_v5 = vld [vmem:[%s2093_s3 + $0x8] sm:$0xff]  ;;  %v103_v7 = vld [vmem:[%s2093_s3 + $0x10] sm:$0xff]  ;;  %v1327_v10 = vmov 0   ;;  %vm106_vm2 = vcmask 261120   ;;  %v185_v18 = vlaneseq  ;;  %s1332_s14 = smov 122  }
   0x2   :  { %v23_v2 = vld [vmem:[%s2092_s0] sm:$0x1]  ;;  %1181 = vmatpush3.msra.mxu0 %v24_v1  ;;  %1196 = vmatprep.subr.bf16.mxu1 %v1326_v4  ;;  %v104_v8 = vld [vmem:[%s2093_s3 + $0x18] sm:$0xff]  ;;  %s1333_s15 = smov 123   ;;  %s1334_s16 = smov 120   ;;  %v1344_v28 = vmov 33  }
   0x3   :  { %v101_v3 = vld [vmem:[%s2093_s3] sm:$0xff]  ;;  %1183 = vmatmul.mubr.msk.f32.vlgmr.msra.gmra.mrb[0].mxu0 %vm26_vm0, %v23_v2  ;;  %1193 = vmatprep.mubr.msk.f32.mxu1 %vm1325_vm1, %v1324_v0  ;;  %v1200_v9 = vpack.c.bf16 %v104_v8, %v103_v7  ;;  %v1433_v19 = vshrl.u32 %v185_v18, 7  ;;  %s1335_s17 = smov 121   ;;  %s1336_s18 = smov 118   ;;  %vm181_vm11 = vcmask 262144   ;;  %vm1091_vm12 = vcmask 130048  }
   0x4   :  { %v1197_v6 = vpack.c.bf16 %v102_v5, %v101_v3  ;;  %1310 = vset.pattern.permute.xlu0 %v1327_v10  ;;  %v214_v11 = vld [vmem:[%s2094_s1] sm:$0xff]  ;;  %1314 = vset.pattern.permute.xlu1 %v1327_v10  ;;  %s1337_s19 = smov 119   ;;  %s1338_s20 = smov 116   ;;  %vm1093_vm13 = vcmask 195584   ;;  %vm1096_vm14 = vcmask 269312  }
   0x5   :  { %v215_v12 = vmul.f32 %v214_v11, %v214_v11  ;;  %v25_v13 = vld [vmem:[%s2095_s4] sm:$0x1]  ;;  %v1439_v21 = vsub.s32 0, %v1433_v19  ;;  %s1328_s4 = smov 127   ;;  %s1339_s21 = smov 117  }
   0x6   :  { %1198 = vmatpush3.bf16.msra.mxu1 %v1197_v6  ;;  %v105_v20 = vld [vmem:[%s2096_s5] sm:$0x1]  ;;  %s1330_s5 = smov 124   ;;  %s1340_s22 = smov 115  }
   0x7   :  { %1199 = vmatprep.subr.bf16.mxu1 %v1326_v4  ;;  %222 = vperm.xlu0 %1310, %v215_v12   ;;  %s1341_s23 = smov 113   ;;  %s1342_s24 = smov 114  }
   0x8   :  { %s1343_s25 = smov 112   ;;  %s1345_s26 = smov 111  }
   0x9   :  { %s1346_s27 = smov 110   ;;  %s1347_s28 = smov 109  }
   0xa   :  { %1201 = vmatpush3.bf16.msra.mxu1 %v1200_v9  ;;  %s1348_s2 = smov 107   ;;  %s1349_s29 = smov 105   ;;  %v1354_v9 = vmov 1.0  }
   0xb   :  { %s1350_s30 = smov 103   ;;  %s1351_s7 = smov 101  }
   0xc   :  { %s1352_s8 = smov 99   ;;  %s1353_s9 = smov 97  }
   0xd   :  { %s1356_s10 = smov 108   ;;  %s1357_s11 = smov 106  }
   0xe   :  { %s1358_s1 = smov 104   ;;  %s1359_s3 = smov 102  }
  0x86   :  { %v223_v25 = vpop.permute.xlu0 %222 }
  0xd6   :  { %v96_v14 = vpop.f32.mrb[0].mxu0 }
  0xd7   :  { %v97_v15 = vadd.f32 %v96_v14, %v25_v13  ;;  %v1184_v16 = vpop.f32.mrb[1].mxu0 }
  0xd9   :  { %v100_v17 = vmax.f32 %v97_v15, 0.0  ;;  %v1355_v15 = vmov 34  }
  0xdb   :  { %1194 = vmatmul.mubr.msk.f32.vlgmr.msra.gmra.mrb[0].mxu1 %vm106_vm2, %v100_v17 }
 0x1ae   :  { %v176_v22 = vpop.f32.mrb[0].mxu1 }
 0x1af   :  { %v1441_v23 = vadd.f32 %v176_v22, %v105_v20  ;;  %v1195_v24 = vpop.f32.mrb[1].mxu1 }
 0x1b1   :  { %288 = vrot.lane.b32.xlu1 %v1441_v23, %s1328_s4  ;;  %1202 = vpush %v1441_v23  ;;  %v219_v26 = vrot.slane %v1441_v23, %v1439_v21  ;;  %s1360_s4 = smov 100  }
 0x1b3   :  { %v225_v27 = vmul.f32 %v223_v25, %v219_v26 }
 0x1b5   :  { %299 = vrot.lane.b32.xlu1 %v1441_v23, %s1329_s12  ;;  %227 = vrot.lane.b32.xlu0 %v225_v27, %s1329_s12  ;;  %s1361_s12 = smov 98  }
 0x1b9   :  { %321 = vrot.lane.b32.xlu1 %v1441_v23, %s1330_s5  ;;  %310 = vrot.lane.b32.xlu0 %v1441_v23, %s1331_s13  ;;  %s1362_s5 = smov 96  }
 0x1bd   :  { %343 = vrot.lane.b32.xlu1 %v1441_v23, %s1332_s14  ;;  %332 = vrot.lane.b32.xlu0 %v1441_v23, %s1333_s15 }
 0x1c1   :  { %365 = vrot.lane.b32.xlu1 %v1441_v23, %s1334_s16  ;;  %354 = vrot.lane.b32.xlu0 %v1441_v23, %s1335_s17 }
 0x1c5   :  { %387 = vrot.lane.b32.xlu1 %v1441_v23, %s1336_s18  ;;  %376 = vrot.lane.b32.xlu0 %v1441_v23, %s1337_s19 }
 0x1c9   :  { %409 = vrot.lane.b32.xlu1 %v1441_v23, %s1338_s20  ;;  %398 = vrot.lane.b32.xlu0 %v1441_v23, %s1339_s21 }
 0x1cd   :  { %420 = vrot.lane.b32.xlu1 %v1441_v23, %s1340_s22  ;;  %262 = vperm.xlu0 %1310, %v214_v11  }
 0x1d1   :  { %442 = vrot.lane.b32.xlu1 %v1441_v23, %s1341_s23  ;;  %431 = vrot.lane.b32.xlu0 %v1441_v23, %s1342_s24 }
 0x1d2   :  { %1311 = vset.pattern.permute.xlu0 %v1344_v28 }
 0x1d5   :  { %453 = vrot.lane.b32.xlu1 %v1441_v23, %s1343_s25 }
 0x1d9   :  { %464 = vrot.lane.b32.xlu1 %v1441_v23, %s1345_s26 }
 0x1dd   :  { %475 = vrot.lane.b32.xlu1 %v1441_v23, %s1346_s27 }
 0x1e1   :  { %486 = vrot.lane.b32.xlu1 %v1441_v23, %s1347_s28 }
 0x1e2   :  { %s1492_s13 = spop %1202 }
 0x1e5   :  { %508 = vrot.lane.b32.xlu1 %v1441_v23, %s1348_s2 }
 0x1e9   :  { %530 = vrot.lane.b32.xlu1 %v1441_v23, %s1349_s29 }
 0x1ed   :  { %552 = vrot.lane.b32.xlu1 %v1441_v23, %s1350_s30 }
 0x1f1   :  { %574 = vrot.lane.b32.xlu1 %v1441_v23, %s1351_s7 }
 0x1f5   :  { %596 = vrot.lane.b32.xlu1 %v1441_v23, %s1352_s8 }
 0x1f9   :  { %618 = vrot.lane.b32.xlu1 %v1441_v23, %s1353_s9 }
 0x223   :  { %v289_v29 = vpop.permute.xlu1 %288 }
 0x224   :  { %1204 = vpush %v289_v29 }
 0x227   :  { %v300_v30 = vpop.permute.xlu1 %299  ;;  %v228_v31 = vpop.permute.xlu0 %227 }
 0x228   :  { %v230_v32 = vadd.f32 %v228_v31, %v219_v26  ;;  %1206 = vpush %v300_v30 }
 0x22a   :  { %v233_v33 = vand.u32 2147483647, %v230_v32  ;;  %vm231_vm5 = vcmp.lt.f32.partialorder %v230_v32, 0.0 }
 0x22b   :  { %v322_v34 = vpop.permute.xlu1 %321  ;;  %v311_v35 = vpop.permute.xlu0 %310  ;;  %v232_v11 = vsel %vm231_vm5, -1.0, %v1354_v9 }
 0x22c   :  { %1208 = vpush %v311_v35  ;;  %v239_v36 = vadd.f32 1.0, %v233_v33  ;;  %1315 = vrcp.f32 %v233_v33  ;;  %v1106_v44 = vadd.f32 -1.0, %v233_v33  ;;  %vm235_vm3 = vcmp.gt.f32.partialorder %v233_v33, 0.41421357 }
 0x22d   :  { %1210 = vpush %v322_v34  ;;  %vm234_vm4 = vcmp.gt.f32.partialorder %v233_v33, 2.4142137  ;;  %v244_v63 = vsel %vm235_vm3, 0.7853982, %v1324_v0 }
 0x22e   :  { %1317 = vrcp.f32 %v239_v36  ;;  %v245_v4 = vsel %vm234_vm4, 1.5707964, %v244_v63 }
 0x22f   :  { %v344_v37 = vpop.permute.xlu1 %343  ;;  %v333_v38 = vpop.permute.xlu0 %332 }
 0x230   :  { %1212 = vpush %v333_v38 }
 0x231   :  { %1214 = vpush %v344_v37 }
 0x233   :  { %v366_v39 = vpop.permute.xlu1 %365  ;;  %v355_v40 = vpop.permute.xlu0 %354 }
 0x234   :  { %1216 = vpush %v355_v40 }
 0x235   :  { %1218 = vpush %v366_v39 }
 0x236   :  { %v1316_v43 = vpop.eup %1315 }
 0x237   :  { %v388_v41 = vpop.permute.xlu1 %387  ;;  %v377_v42 = vpop.permute.xlu0 %376  ;;  %v237_v47 = vmul.f32 -1.0, %v1316_v43 }
 0x238   :  { %1220 = vpush %v377_v42  ;;  %v1318_v45 = vpop.eup %1317 }
 0x239   :  { %1222 = vpush %v388_v41  ;;  %v241_v46 = vmul.f32 %v1318_v45, %v1106_v44 }
 0x23b   :  { %v410_v48 = vpop.permute.xlu1 %409  ;;  %v399_v49 = vpop.permute.xlu0 %398  ;;  %v242_v50 = vsel %vm235_vm3, %v241_v46, %v233_v33 }
 0x23c   :  { %1224 = vpush %v399_v49  ;;  %v243_v51 = vsel %vm234_vm4, %v237_v47, %v242_v50 }
 0x23d   :  { %1226 = vpush %v410_v48  ;;  %v246_v52 = vmul.f32 %v243_v51, %v243_v51 }
 0x23f   :  { %v421_v53 = vpop.permute.xlu1 %420  ;;  %v247_v54 = vmul.f32 0.080537446, %v246_v52 }
 0x240   :  { %1228 = vpush %v421_v53 }
 0x241   :  { %v1107_v55 = vadd.f32 -0.13877685, %v247_v54 }
 0x243   :  { %v443_v56 = vpop.permute.xlu1 %442  ;;  %v249_v57 = vmul.f32 %v1107_v55, %v246_v52 }
 0x245   :  { %v250_v58 = vadd.f32 0.19977711, %v249_v57 }
 0x247   :  { %v454_v59 = vpop.permute.xlu1 %453  ;;  %v251_v60 = vmul.f32 %v250_v58, %v246_v52 }
 0x249   :  { %v1108_v61 = vadd.f32 -0.3333295, %v251_v60 }
 0x24b   :  { %v465_v62 = vpop.permute.xlu1 %464  ;;  %v253_v1 = vmul.f32 %v1108_v61, %v246_v52 }
 0x24c   :  { %v263_v2 = vpop.permute.xlu0 %262 }
 0x24d   :  { %v254_v3 = vmul.f32 %v253_v1, %v243_v51 }
 0x24f   :  { %v476_v5 = vpop.permute.xlu1 %475  ;;  %v255_v6 = vadd.f32 %v254_v3, %v245_v4 }
 0x250   :  { %v432_v7 = vpop.permute.xlu0 %431 }
 0x251   :  { %1230 = vpush %v432_v7  ;;  %v256_v8 = vadd.f32 %v255_v6, %v243_v51 }
 0x252   :  { %1232 = vpush %v443_v56 }
 0x253   :  { %1234 = vpush %v454_v59  ;;  %v487_v12 = vpop.permute.xlu1 %486  ;;  %v257_v13 = vmul.f32 %v256_v8, %v232_v11 }
 0x254   :  { %1236 = vpush %v465_v62 }
 0x255   :  { %1238 = vpush %v476_v5  ;;  %v258_v0 = vmul.f32 0.63661975, %v257_v13  ;;  %s1494_s14 = spop %1204 }
 0x256   :  { %1240 = vpush %v487_v12 }
 0x257   :  { %v259_v14 = vmul.f32 8.0, %v258_v0  ;;  %v509_v28 = vpop.permute.xlu1 %508 }
 0x259   :  { %270 = vperm.xlu0 %1311, %v259_v14   ;;  %s1496_s15 = spop %1206 }
 0x25b   :  { %v531_v37 = vpop.permute.xlu1 %530 }
 0x25d   :  { %1312 = vset.pattern.permute.xlu0 %v1355_v15  ;;  %s1499_s16 = spop %1208 }
 0x25e   :  { %748 = vperm.xlu0 %1312, %v259_v14   ;;  %s1501_s17 = spop %1210 }
 0x25f   :  { %v553_v58 = vpop.permute.xlu1 %552 }
 0x261   :  { %s1503_s18 = spop %1212 }
 0x262   :  { %497 = vrot.lane.b32.xlu0 %v1441_v23, %s1356_s10  ;;  %s1505_s19 = spop %1214 }
 0x263   :  { %1313 = vset.pattern.permute.xlu0 %v1327_v10  ;;  %v1486_v10 = vand.u32 127, %v185_v18 }
 0x265   :  { %v187_v16 = vcvt.s32.f32 %v1486_v10  ;;  %s1507_s20 = spop %1216  ;;  %vm204_vm6 = vcmp.eq.s32.totalorder %v1486_v10, 0  ;;  %vm205_vm7 = vcmp.eq.s32.totalorder %v1486_v10, 100  ;;  %vm203_vm9 = vcmp.gt.s32.totalorder %v1486_v10, 100 }
 0x266   :  { %519 = vrot.lane.b32.xlu0 %v1441_v23, %s1357_s11  ;;  %s1509_s21 = spop %1218  ;;  %vm206_vm8 = vmor %vm204_vm6, %vm205_vm7 }
 0x267   :  { %v189_v17 = vmul.f32 0.02, %v187_v16  ;;  %v207_v35 = vsel %vm206_vm8, 0.5, %v1354_v9 }
 0x268   :  { %v1551_v57 = vsel %vm203_vm9, 0.0, %v207_v35 }
 0x269   :  { %v1489_v20 = vadd.f32 -1.0, %v189_v17  ;;  %s1513_s22 = spop %1220 }
 0x26a   :  { %541 = vrot.lane.b32.xlu0 %v1441_v23, %s1358_s1  ;;  %s1515_s23 = spop %1222 }
 0x26b   :  { %v191_v22 = vand.u32 2147483647, %v1489_v20  ;;  %v265_v26 = vmul.f32 %v1489_v20, %v263_v2  ;;  %vm195_vm10 = vcmp.ge.f32.partialorder %v1489_v20, 0.0 }
 0x26d   :  { %v192_v24 = vsub.f32 0.0, %v191_v22  ;;  %v266_v18 = vadd.f32 2.0, %v265_v26  ;;  %s1519_s24 = spop %1224 }
 0x26e   :  { %563 = vrot.lane.b32.xlu0 %v1441_v23, %s1359_s3  ;;  %s1521_s25 = spop %1226 }
 0x26f   :  { %v193_v25 = vmul.f32 1.442695, %v192_v24  ;;  %v267_v27 = vmul.f32 8.0, %v266_v18  ;;  %v575_v18 = vpop.permute.xlu1 %574 }
 0x271   :  { %1319 = vpow2.f32 %v193_v25  ;;  %s1526_s26 = spop %1228 }
 0x272   :  { %585 = vrot.lane.b32.xlu0 %v1441_v23, %s1360_s4 }
 0x276   :  { %607 = vrot.lane.b32.xlu0 %v1441_v23, %s1361_s12 }
 0x27a   :  { %629 = vrot.lane.b32.xlu0 %v1441_v23, %s1362_s5 }
 0x27b   :  { %v1517_v31 = vpop.eup %1319 }
 0x27c   :  { %v196_v38 = vadd.f32 1.0, %v1517_v31 }
 0x27e   :  { %1321 = vrcp.f32 %v196_v38 }
 0x282   :  { %s1532_s27 = spop %1230 }
 0x283   :  { %s1553_s28 = spop %1232 }
 0x284   :  { %s1579_s2 = spop %1234 }
 0x285   :  { %s1601_s29 = spop %1236 }
 0x286   :  { %s1620_s30 = spop %1238 }
 0x287   :  { %s1625_s7 = spop %1240 }
 0x288   :  { %v1632_v38 = vpop.eup %1321 }
 0x2d8   :  { %v271_v29 = vpop.permute.xlu0 %270 }
 0x2d9   :  { %v273_v30 = vadd.f32 %v271_v29, %v267_v27 }
 0x2db   :  { %v274_v32 = vmax.f32 %v273_v30, 0.0 }
 0x2dd   :  { %v749_v33 = vpop.permute.xlu0 %748  ;;  %v1534_v42 = vmin.f32 %v274_v32, 32.0 }
 0x2de   :  { %v751_v56 = vadd.f32 %v749_v33, %v267_v27 }
 0x2df   :  { %v276_v54 = vand.u32 2147483647, %v1534_v42  ;;  %v1549_v55 = vadd.f32 -1.0, %v1534_v42  ;;  %v1556_v59 = vadd.f32 -2.0, %v1534_v42  ;;  %v1559_v60 = vadd.f32 -3.0, %v1534_v42 }
 0x2e0   :  { %v1562_v61 = vadd.f32 -4.0, %v1534_v42  ;;  %v1565_v62 = vadd.f32 -5.0, %v1534_v42  ;;  %v1568_v63 = vadd.f32 -6.0, %v1534_v42  ;;  %v1571_v1 = vadd.f32 -7.0, %v1534_v42 }
 0x2e1   :  { %v498_v50 = vpop.permute.xlu0 %497  ;;  %v1574_v2 = vadd.f32 -8.0, %v1534_v42  ;;  %v1577_v3 = vadd.f32 -9.0, %v1534_v42  ;;  %v1582_v5 = vadd.f32 -10.0, %v1534_v42  ;;  %v1585_v6 = vadd.f32 -11.0, %v1534_v42 }
 0x2e2   :  { %1242 = vpush %v498_v50  ;;  %v1588_v7 = vadd.f32 -12.0, %v1534_v42  ;;  %v1591_v8 = vadd.f32 -13.0, %v1534_v42  ;;  %v1594_v9 = vadd.f32 -14.0, %v1534_v42  ;;  %v1597_v11 = vadd.f32 -15.0, %v1534_v42 }
 0x2e3   :  { %1244 = vpush %v509_v28  ;;  %v752_v12 = vmax.f32 %v751_v56, 0.0  ;;  %v1599_v13 = vsub.f32 1.0, %v276_v54  ;;  %v1604_v0 = vadd.f32 -16.0, %v1534_v42  ;;  %v1607_v14 = vadd.f32 -17.0, %v1534_v42 }
 0x2e4   :  { %v1610_v15 = vadd.f32 -18.0, %v1534_v42  ;;  %v1613_v16 = vadd.f32 -19.0, %v1534_v42  ;;  %v285_v22 = vand.u32 2147483647, %v1549_v55  ;;  %v296_v24 = vand.u32 2147483647, %v1556_v59 }
 0x2e5   :  { %v520_v4 = vpop.permute.xlu0 %519  ;;  %v307_v25 = vand.u32 2147483647, %v1559_v60  ;;  %v318_v28 = vand.u32 2147483647, %v1562_v61  ;;  %v329_v29 = vand.u32 2147483647, %v1565_v62 }
 0x2e6   :  { %1246 = vpush %v520_v4  ;;  %v340_v30 = vand.u32 2147483647, %v1568_v63  ;;  %v1627_v32 = vmin.f32 %v752_v12, 32.0  ;;  %v351_v33 = vand.u32 2147483647, %v1571_v1  ;;  %v286_v49 = vsub.f32 1.0, %v285_v22 }
 0x2e7   :  { %1248 = vpush %v531_v37  ;;  %v362_v35 = vand.u32 2147483647, %v1574_v2  ;;  %v278_v37 = vmax.f32 %v1599_v13, 0.0  ;;  %v373_v54 = vand.u32 2147483647, %v1577_v3  ;;  %v297_v48 = vsub.f32 1.0, %v296_v24 }
 0x2e8   :  { %v384_v55 = vand.u32 2147483647, %v1582_v5  ;;  %v395_v56 = vand.u32 2147483647, %v1585_v6  ;;  %v406_v60 = vand.u32 2147483647, %v1588_v7  ;;  %v199_v7 = vmul.f32 %v1632_v38, %v1517_v31 }
 0x2e9   :  { %v542_v26 = vpop.permute.xlu0 %541  ;;  %v417_v61 = vand.u32 2147483647, %v1591_v8  ;;  %v428_v62 = vand.u32 2147483647, %v1594_v9  ;;  %v450_v2 = vand.u32 2147483647, %v1604_v0  ;;  %v597_v8 = vpop.permute.xlu1 %596 }
 0x2ea   :  { %1250 = vpush %v542_v26  ;;  %v461_v4 = vand.u32 2147483647, %v1607_v14  ;;  %v472_v3 = vand.u32 2147483647, %v1610_v15  ;;  %v483_v5 = vand.u32 2147483647, %v1613_v16 }
 0x2eb   :  { %1252 = vpush %v553_v58  ;;  %v439_v58 = vand.u32 2147483647, %v1597_v11  ;;  %v1653_v9 = vadd.f32 -1.0, %v1627_v32  ;;  %v1656_v11 = vadd.f32 -2.0, %v1627_v32  ;;  %v1659_v12 = vadd.f32 -3.0, %v1627_v32 }
 0x2ec   :  { %v1662_v0 = vadd.f32 -4.0, %v1627_v32  ;;  %v1665_v14 = vadd.f32 -5.0, %v1627_v32  ;;  %v1668_v15 = vadd.f32 -6.0, %v1627_v32  ;;  %v1671_v31 = vadd.f32 -7.0, %v1627_v32 }
 0x2ed   :  { %v564_v63 = vpop.permute.xlu0 %563  ;;  %v1674_v16 = vadd.f32 -8.0, %v1627_v32  ;;  %v1683_v1 = vadd.f32 -11.0, %v1627_v32  ;;  %v1686_v59 = vadd.f32 -12.0, %v1627_v32  ;;  %v1689_v50 = vadd.f32 -13.0, %v1627_v32  ;;  %v619_v43 = vpop.permute.xlu1 %618 }
 0x2ee   :  { %1254 = vpush %v564_v63  ;;  %v1680_v63 = vadd.f32 -10.0, %v1627_v32  ;;  %v1692_v27 = vadd.f32 -14.0, %v1627_v32  ;;  %v1695_v17 = vadd.f32 -15.0, %v1627_v32  ;;  %v1698_v53 = vadd.f32 -16.0, %v1627_v32 }
 0x2ef   :  { %1256 = vpush %v575_v18  ;;  %v1677_v18 = vadd.f32 -9.0, %v1627_v32  ;;  %v1701_v52 = vadd.f32 -17.0, %v1627_v32  ;;  %v1704_v51 = vadd.f32 -18.0, %v1627_v32  ;;  %v308_v47 = vsub.f32 1.0, %v307_v25 }
 0x2f0   :  { %v319_v46 = vsub.f32 1.0, %v318_v28  ;;  %v330_v45 = vsub.f32 1.0, %v329_v29  ;;  %v341_v41 = vsub.f32 1.0, %v340_v30  ;;  %v1709_v40 = vsub.f32 1.0, %v351_v33 }
 0x2f1   :  { %v586_v26 = vpop.permute.xlu0 %585  ;;  %v1713_v6 = vsub.f32 1.0, %v373_v54  ;;  %v1715_v39 = vsub.f32 1.0, %v384_v55  ;;  %v1717_v36 = vsub.f32 1.0, %v395_v56  ;;  %v1719_v34 = vsub.f32 1.0, %v406_v60 }
 0x2f2   :  { %1258 = vpush %v586_v26  ;;  %v1707_v26 = vadd.f32 -19.0, %v1627_v32  ;;  %v1721_v22 = vsub.f32 1.0, %v417_v61  ;;  %v1723_v24 = vsub.f32 1.0, %v428_v62  ;;  %v1725_v25 = vsub.f32 1.0, %v439_v58 }
 0x2f3   :  { %1260 = vpush %v597_v8  ;;  %v1711_v8 = vsub.f32 1.0, %v362_v35  ;;  %v1727_v28 = vsub.f32 1.0, %v450_v2  ;;  %v1729_v29 = vsub.f32 1.0, %v461_v4  ;;  %v1731_v30 = vsub.f32 1.0, %v472_v3 }
 0x2f4   :  { %v759_v33 = vand.u32 2147483647, %v1653_v9  ;;  %v765_v35 = vand.u32 2147483647, %v1656_v11  ;;  %v1743_v60 = vsel %vm195_vm10, %v1632_v38, %v199_v7  ;;  %v287_v58 = vmax.f32 %v286_v49, 0.0 }
 0x2f5   :  { %v608_v44 = vpop.permute.xlu0 %607  ;;  %v298_v2 = vmax.f32 %v297_v48, 0.0  ;;  %v2099_v61 = vstv %s1494_s14  ;;  %v309_v49 = vmax.f32 %v308_v47, 0.0  ;;  %v831_v48 = vand.u32 2147483647, %v1689_v50 }
 0x2f6   :  { %1262 = vpush %v608_v44  ;;  %v1733_v44 = vsub.f32 1.0, %v483_v5  ;;  %v293_v55 = vmul.f32 %v2099_v61, %v287_v58  ;;  %v837_v4 = vand.u32 2147483647, %v1692_v27  ;;  %v320_v3 = vmax.f32 %v319_v46, 0.0 }
 0x2f7   :  { %1264 = vpush %v619_v43  ;;  %v331_v5 = vmax.f32 %v330_v45, 0.0  ;;  %v843_v13 = vand.u32 2147483647, %v1695_v17  ;;  %v2100_v38 = vstv %s1496_s15  ;;  %v2101_v7 = vand.u32 2147483647, %v1627_v32 }
 0x2f8   :  { %v304_v62 = vmul.f32 %v2100_v38, %v298_v2  ;;  %v855_v47 = vand.u32 2147483647, %v1701_v52  ;;  %v861_v50 = vand.u32 2147483647, %v1704_v51  ;;  %v342_v27 = vmax.f32 %v341_v41, 0.0 }
 0x2f9   :  { %v630_v54 = vpop.permute.xlu0 %629  ;;  %v1766_v61 = vsub.f32 1.0, %v2101_v7  ;;  %v867_v46 = vand.u32 2147483647, %v1707_v26  ;;  %v2102_v58 = vstv %s1499_s16  ;;  %v2104_v2 = vstv %s1503_s18 }
 0x2fa   :  { %1266 = vpush %v630_v54  ;;  %v2098_v54 = vstv %s1492_s13  ;;  %v315_v17 = vmul.f32 %v2102_v58, %v309_v49  ;;  %v337_v38 = vmul.f32 %v2104_v2, %v331_v5  ;;  %v364_v7 = vmax.f32 %v1711_v8, 0.0 }
 0x2fb   :  { %v283_v56 = vmul.f32 %v2098_v54, %v278_v37  ;;  %v849_v37 = vand.u32 2147483647, %v1698_v53  ;;  %v353_v53 = vmax.f32 %v1709_v40, 0.0  ;;  %v375_v52 = vmax.f32 %v1713_v6, 0.0 }
 0x2fc   :  { %v386_v41 = vmax.f32 %v1715_v39, 0.0  ;;  %v397_v26 = vmax.f32 %v1717_v36, 0.0  ;;  %v2105_v40 = vstv %s1505_s19  ;;  %v419_v5 = vmax.f32 %v1721_v22, 0.0 }
 0x2fd   :  { %v294_v54 = vadd.f32 %v293_v55, %v283_v56  ;;  %v2103_v55 = vstv %s1501_s17  ;;  %v430_v8 = vmax.f32 %v1723_v24, 0.0  ;;  %v441_v6 = vmax.f32 %v1725_v25, 0.0 }
 0x2fe   :  { %v326_v56 = vmul.f32 %v2103_v55, %v320_v3  ;;  %v348_v3 = vmul.f32 %v2105_v40, %v342_v27  ;;  %v2106_v39 = vstv %s1507_s20  ;;  %v452_v36 = vmax.f32 %v1727_v28, 0.0 }
 0x2ff   :  { %v305_v45 = vadd.f32 %v304_v62, %v294_v54  ;;  %v408_v62 = vmax.f32 %v1719_v34, 0.0  ;;  %v359_v54 = vmul.f32 %v2106_v39, %v353_v53  ;;  %v463_v34 = vmax.f32 %v1729_v29, 0.0 }
 0x300   :  { %v2108_v58 = vstv %s1513_s22  ;;  %v474_v24 = vmax.f32 %v1731_v30, 0.0  ;;  %v2109_v55 = vstv %s1515_s23  ;;  %v2110_v53 = vstv %s1519_s24 }
 0x301   :  { %v316_v51 = vadd.f32 %v315_v17, %v305_v45  ;;  %v2107_v45 = vstv %s1509_s21  ;;  %v381_v22 = vmul.f32 %v2108_v58, %v375_v52  ;;  %v485_v17 = vmax.f32 %v1733_v44, 0.0 }
 0x302   :  { %v370_v27 = vmul.f32 %v2107_v45, %v364_v7  ;;  %v403_v2 = vmul.f32 %v2110_v53, %v397_v26  ;;  %v2112_v40 = vstv %s1526_s26  ;;  %v2113_v29 = vstv %s1532_s27 }
 0x303   :  { %v327_v49 = vadd.f32 %v326_v56, %v316_v51  ;;  %v392_v56 = vmul.f32 %v2109_v55, %v386_v41  ;;  %v2111_v51 = vstv %s1521_s25  ;;  %v425_v39 = vmul.f32 %v2112_v40, %v419_v5 }
 0x304   :  { %v414_v28 = vmul.f32 %v2111_v51, %v408_v62  ;;  %v1808_v43 = vmul.f32 %v2113_v29, %v430_v8  ;;  %v2114_v7 = vstv %s1553_s28  ;;  %v756_v52 = vmax.f32 %v1766_v61, 0.0 }
 0x305   :  { %v338_v25 = vadd.f32 %v337_v38, %v327_v49  ;;  %v1812_v45 = vmul.f32 %v2114_v7, %v441_v6  ;;  %v2115_v58 = vstv %s1579_s2  ;;  %v2116_v38 = vstv %s1601_s29 }
 0x306   :  { %v1817_v44 = vmul.f32 %v2115_v58, %v452_v36  ;;  %v1821_v41 = vmul.f32 %v2116_v38, %v463_v34  ;;  %v760_v26 = vsub.f32 1.0, %v759_v33  ;;  %v2117_v62 = vstv %s1620_s30 }
 0x307   :  { %v349_v30 = vadd.f32 %v348_v3, %v338_v25  ;;  %v1827_v5 = vmul.f32 %v2117_v62, %v474_v24  ;;  %v2118_v8 = vstv %s1625_s7  ;;  %v766_v6 = vsub.f32 1.0, %v765_v35 }
 0x308   :  { %v1831_v49 = vmul.f32 %v2118_v8, %v485_v17  ;;  %v2119_v61 = vand.u32 2147483647, %v1659_v12  ;;  %v2120_v25 = vand.u32 2147483647, %v1662_v0  ;;  %v2121_v55 = vand.u32 2147483647, %v1665_v14 }
 0x309   :  { %v360_v36 = vadd.f32 %v359_v54, %v349_v30  ;;  %v2122_v33 = vand.u32 2147483647, %v1668_v15  ;;  %v2123_v53 = vand.u32 2147483647, %v1671_v31  ;;  %v2124_v51 = vand.u32 2147483647, %v1674_v16 }
 0x30a   :  { %v772_v3 = vsub.f32 1.0, %v2119_v61  ;;  %v778_v34 = vsub.f32 1.0, %v2120_v25  ;;  %v784_v9 = vsub.f32 1.0, %v2121_v55  ;;  %v2125_v12 = vand.u32 2147483647, %v1677_v18 }
 0x30b   :  { %v790_v24 = vsub.f32 1.0, %v2122_v33  ;;  %v796_v17 = vsub.f32 1.0, %v2123_v53  ;;  %v802_v11 = vsub.f32 1.0, %v2124_v51  ;;  %v2126_v54 = vand.u32 2147483647, %v1680_v63 }
 0x30c   :  { %v808_v35 = vsub.f32 1.0, %v2125_v12  ;;  %v371_v40 = vadd.f32 %v370_v27, %v360_v36  ;;  %v2127_v14 = vand.u32 2147483647, %v1683_v1  ;;  %v2128_v15 = vand.u32 2147483647, %v1686_v59 }
 0x30d   :  { %v814_v0 = vsub.f32 1.0, %v2126_v54  ;;  %v832_v30 = vsub.f32 1.0, %v831_v48  ;;  %v838_v31 = vsub.f32 1.0, %v837_v4  ;;  %v844_v58 = vsub.f32 1.0, %v843_v13 }
 0x30e   :  { %v820_v29 = vsub.f32 1.0, %v2127_v14  ;;  %v826_v7 = vsub.f32 1.0, %v2128_v15  ;;  %v850_v38 = vsub.f32 1.0, %v849_v37  ;;  %v761_v16 = vmax.f32 %v760_v26, 0.0 }
 0x30f   :  { %v382_v62 = vadd.f32 %v381_v22, %v371_v40  ;;  %v856_v8 = vsub.f32 1.0, %v855_v47  ;;  %v1855_v18 = vsub.f32 1.0, %v861_v50  ;;  %v1857_v61 = vsub.f32 1.0, %v867_v46 }
 0x310   :  { %v2129_v63 = vstv %s1492_s13  ;;  %v767_v36 = vmax.f32 %v766_v6, 0.0  ;;  %v773_v1 = vmax.f32 %v772_v3, 0.0  ;;  %v779_v25 = vmax.f32 %v778_v34, 0.0 }
 0x311   :  { %v757_v27 = vmul.f32 %v756_v52, %v2129_v63  ;;  %v393_v55 = vadd.f32 %v392_v56, %v382_v62  ;;  %v785_v59 = vmax.f32 %v784_v9, 0.0  ;;  %v791_v33 = vmax.f32 %v790_v24, 0.0 }
 0x312   :  { %v797_v48 = vmax.f32 %v796_v17, 0.0  ;;  %v803_v4 = vmax.f32 %v802_v11, 0.0  ;;  %v809_v13 = vmax.f32 %v808_v35, 0.0  ;;  %v815_v37 = vmax.f32 %v814_v0, 0.0 }
 0x313   :  { %v2130_v47 = vstv %s1494_s14  ;;  %v404_v22 = vadd.f32 %v403_v2, %v393_v55  ;;  %v821_v46 = vmax.f32 %v820_v29, 0.0  ;;  %v827_v26 = vmax.f32 %v826_v7, 0.0  ;;  %s1896_s8 = spop %1242 }
 0x314   :  { %v762_v50 = vmul.f32 %v761_v16, %v2130_v47  ;;  %v833_v52 = vmax.f32 %v832_v30, 0.0  ;;  %v839_v6 = vmax.f32 %v838_v31, 0.0  ;;  %v845_v56 = vmax.f32 %v844_v58, 0.0  ;;  %s1923_s9 = spop %1244 }
 0x315   :  { %v851_v3 = vmax.f32 %v850_v38, 0.0  ;;  %v857_v34 = vmax.f32 %v856_v8, 0.0  ;;  %v415_v9 = vadd.f32 %v414_v28, %v404_v22  ;;  %v863_v24 = vmax.f32 %v1855_v18, 0.0 }
 0x316   :  { %v869_v53 = vmax.f32 %v1857_v61, 0.0  ;;  %v2131_v17 = vstv %s1496_s15  ;;  %v2132_v51 = vstv %s1499_s16  ;;  %v2133_v12 = vstv %s1501_s17 }
 0x317   :  { %v768_v2 = vmul.f32 %v767_v36, %v2131_v17  ;;  %v774_v11 = vmul.f32 %v773_v1, %v2132_v51  ;;  %v780_v35 = vmul.f32 %v779_v25, %v2133_v12  ;;  %v763_v54 = vadd.f32 %v762_v50, %v757_v27  ;;  %s1926_s10 = spop %1246 }
 0x318   :  { %v1128_v0 = vadd.f32 -20.0, %v1534_v42  ;;  %v426_v40 = vadd.f32 %v425_v39, %v415_v9  ;;  %v2134_v14 = vstv %s1503_s18  ;;  %v2135_v28 = vstv %s1505_s19  ;;  %s1943_s11 = spop %1248  ;;  %s1364_s19 = smov 8  }
 0x319   :  { %v786_v29 = vmul.f32 %v785_v59, %v2134_v14  ;;  %v792_v15 = vmul.f32 %v791_v33, %v2135_v28  ;;  %v1129_v7 = vadd.f32 -21.0, %v1534_v42  ;;  %v2136_v30 = vstv %s1507_s20  ;;  %s1365_s20 = smov 24  }
 0x31a   :  { %v798_v31 = vmul.f32 %v797_v48, %v2136_v30  ;;  %v2137_v58 = vstv %s1509_s21  ;;  %v769_v16 = vadd.f32 %v768_v2, %v763_v54  ;;  %v494_v62 = vand.u32 2147483647, %v1128_v0 }
 0x31b   :  { %v804_v38 = vmul.f32 %v803_v4, %v2137_v58  ;;  %v437_v8 = vadd.f32 %v1808_v43, %v426_v40  ;;  %v2138_v18 = vstv %s1513_s22  ;;  %v2139_v39 = vstv %s1515_s23  ;;  %s1946_s1 = spop %1250 }
 0x31c   :  { %v810_v61 = vmul.f32 %v809_v13, %v2138_v18  ;;  %v1886_v63 = vmul.f32 %v815_v37, %v2139_v39  ;;  %v1130_v27 = vadd.f32 -22.0, %v1534_v42  ;;  %v2140_v36 = vstv %s1519_s24  ;;  %s1954_s3 = spop %1252 }
 0x31d   :  { %v1891_v1 = vmul.f32 %v821_v46, %v2140_v36  ;;  %v775_v25 = vadd.f32 %v774_v11, %v769_v16  ;;  %v1160_v55 = vadd.f32 -20.0, %v1627_v32  ;;  %v1161_v59 = vadd.f32 -21.0, %v1627_v32 }
 0x31e   :  { %v448_v43 = vadd.f32 %v1812_v45, %v437_v8  ;;  %v495_v33 = vsub.f32 1.0, %v494_v62  ;;  %v505_v48 = vand.u32 2147483647, %v1129_v7  ;;  %v516_v4 = vand.u32 2147483647, %v1130_v27 }
 0x31f   :  { %v2141_v13 = vstv %s1521_s25  ;;  %v2142_v47 = vstv %s1526_s26  ;;  %v2143_v22 = vstv %s1532_s27  ;;  %v781_v9 = vadd.f32 %v780_v35, %v775_v25  ;;  %s1971_s4 = spop %1254 }
 0x320   :  { %v1900_v37 = vmul.f32 %v827_v26, %v2141_v13  ;;  %v1904_v50 = vmul.f32 %v833_v52, %v2142_v47  ;;  %v1908_v46 = vmul.f32 %v839_v6, %v2143_v22  ;;  %v459_v45 = vadd.f32 %v1817_v44, %v448_v43  ;;  %s1978_s12 = spop %1256 }
 0x321   :  { %v2144_v17 = vstv %s1553_s28  ;;  %v2145_v51 = vstv %s1579_s2  ;;  %v2146_v12 = vstv %s1601_s29  ;;  %v787_v52 = vadd.f32 %v786_v29, %v781_v9 }
 0x322   :  { %v1913_v2 = vmul.f32 %v845_v56, %v2144_v17  ;;  %v1917_v11 = vmul.f32 %v851_v3, %v2145_v51  ;;  %v1921_v26 = vmul.f32 %v857_v34, %v2146_v12  ;;  %v500_v6 = vstv %s1896_s8 }
 0x323   :  { %v873_v54 = vand.u32 2147483647, %v1160_v55  ;;  %v879_v0 = vand.u32 2147483647, %v1161_v59  ;;  %v470_v44 = vadd.f32 %v1821_v41, %v459_v45  ;;  %v496_v56 = vmax.f32 %v495_v33, 0.0  ;;  %s1983_s5 = spop %1258 }
 0x324   :  { %v506_v35 = vsub.f32 1.0, %v505_v48  ;;  %v517_v40 = vsub.f32 1.0, %v516_v4  ;;  %v2147_v3 = vstv %s1620_s30  ;;  %v2148_v34 = vstv %s1625_s7  ;;  %s1998_s13 = spop %1260 }
 0x325   :  { %v1931_v14 = vmul.f32 %v863_v24, %v2147_v3  ;;  %v1935_v28 = vmul.f32 %v869_v53, %v2148_v34  ;;  %v793_v7 = vadd.f32 %v792_v15, %v787_v52  ;;  %v1131_v29 = vadd.f32 -23.0, %v1534_v42 }
 0x326   :  { %v481_v30 = vadd.f32 %v1827_v5, %v470_v44  ;;  %v502_v58 = vmul.f32 %v500_v6, %v496_v56  ;;  %v511_v16 = vstv %s1923_s9  ;;  %v522_v62 = vstv %s1926_s10 }
 0x327   :  { %v799_v8 = vadd.f32 %v798_v31, %v793_v7  ;;  %v874_v41 = vsub.f32 1.0, %v873_v54  ;;  %v527_v18 = vand.u32 2147483647, %v1131_v29  ;;  %v1132_v39 = vadd.f32 -24.0, %v1534_v42  ;;  %s2011_s14 = spop %1262 }
 0x328   :  { %v492_v24 = vadd.f32 %v1831_v49, %v481_v30  ;;  %v507_v27 = vmax.f32 %v506_v35, 0.0  ;;  %v880_v36 = vsub.f32 1.0, %v879_v0  ;;  %v518_v53 = vmax.f32 %v517_v40, 0.0  ;;  %s2022_s15 = spop %1264 }
 0x329   :  { %v805_v15 = vadd.f32 %v804_v38, %v799_v8  ;;  %v1162_v5 = vadd.f32 -22.0, %v1627_v32  ;;  %v528_v25 = vsub.f32 1.0, %v527_v18  ;;  %v538_v55 = vand.u32 2147483647, %v1132_v39 }
 0x32a   :  { %v503_v31 = vadd.f32 %v502_v58, %v492_v24  ;;  %v513_v59 = vmul.f32 %v511_v16, %v507_v27  ;;  %v524_v43 = vmul.f32 %v522_v62, %v518_v53  ;;  %v1133_v49 = vadd.f32 -25.0, %v1534_v42 }
 0x32b   :  { %v811_v33 = vadd.f32 %v810_v61, %v805_v15  ;;  %v875_v48 = vmax.f32 %v874_v41, 0.0  ;;  %v533_v4 = vstv %s1943_s11  ;;  %v539_v13 = vsub.f32 1.0, %v538_v55  ;;  %s2026_s16 = spop %1266 }
 0x32c   :  { %v514_v38 = vadd.f32 %v513_v59, %v503_v31  ;;  %v529_v47 = vmax.f32 %v528_v25, 0.0  ;;  %v544_v22 = vstv %s1946_s1  ;;  %v549_v9 = vand.u32 2147483647, %v1133_v49 }
 0x32d   :  { %v817_v45 = vadd.f32 %v1886_v63, %v811_v33  ;;  %v881_v17 = vmax.f32 %v880_v36, 0.0  ;;  %v885_v51 = vand.u32 2147483647, %v1162_v5  ;;  %v540_v12 = vmax.f32 %v539_v13, 0.0 }
 0x32e   :  { %v525_v52 = vadd.f32 %v524_v43, %v514_v38  ;;  %v535_v54 = vmul.f32 %v533_v4, %v529_v47  ;;  %v1163_v61 = vadd.f32 -23.0, %v1627_v32  ;;  %v550_v0 = vsub.f32 1.0, %v549_v9 }
 0x32f   :  { %v823_v44 = vadd.f32 %v1891_v1, %v817_v45  ;;  %v546_v56 = vmul.f32 %v544_v22, %v540_v12  ;;  %v1164_v35 = vadd.f32 -24.0, %v1627_v32  ;;  %v1134_v63 = vadd.f32 -26.0, %v1534_v42 }
 0x330   :  { %v1964_v40 = vmul.f32 %v875_v48, %v500_v6  ;;  %v536_v3 = vadd.f32 %v535_v54, %v525_v52  ;;  %v555_v34 = vstv %s1954_s3  ;;  %v1165_v7 = vadd.f32 -25.0, %v1627_v32 }
 0x331   :  { %v829_v29 = vadd.f32 %v1900_v37, %v823_v44  ;;  %v1969_v30 = vmul.f32 %v881_v17, %v511_v16  ;;  %v551_v58 = vmax.f32 %v550_v0, 0.0  ;;  %v560_v8 = vand.u32 2147483647, %v1134_v63 }
 0x332   :  { %v886_v1 = vsub.f32 1.0, %v885_v51  ;;  %v891_v41 = vand.u32 2147483647, %v1163_v61  ;;  %v547_v18 = vadd.f32 %v546_v56, %v536_v3  ;;  %v1135_v39 = vadd.f32 -27.0, %v1534_v42 }
 0x333   :  { %v835_v6 = vadd.f32 %v1904_v50, %v829_v29  ;;  %v897_v24 = vand.u32 2147483647, %v1164_v35  ;;  %v557_v27 = vmul.f32 %v555_v34, %v551_v58  ;;  %v561_v36 = vsub.f32 1.0, %v560_v8 }
 0x334   :  { %v903_v53 = vand.u32 2147483647, %v1165_v7  ;;  %v566_v37 = vstv %s1971_s4  ;;  %v571_v16 = vand.u32 2147483647, %v1135_v39  ;;  %v1136_v15 = vadd.f32 -28.0, %v1534_v42 }
 0x335   :  { %v841_v5 = vadd.f32 %v1908_v46, %v835_v6  ;;  %v558_v25 = vadd.f32 %v557_v27, %v547_v18  ;;  %v562_v55 = vmax.f32 %v561_v36, 0.0  ;;  %v1166_v31 = vadd.f32 -26.0, %v1627_v32 }
 0x336   :  { %v887_v50 = vmax.f32 %v886_v1, 0.0  ;;  %v892_v59 = vsub.f32 1.0, %v891_v41  ;;  %v572_v43 = vsub.f32 1.0, %v571_v16  ;;  %v582_v49 = vand.u32 2147483647, %v1136_v15 }
 0x337   :  { %v847_v33 = vadd.f32 %v1913_v2, %v841_v5  ;;  %v898_v48 = vsub.f32 1.0, %v897_v24  ;;  %v568_v13 = vmul.f32 %v566_v37, %v562_v55  ;;  %v577_v38 = vstv %s1978_s12 }
 0x338   :  { %v904_v46 = vsub.f32 1.0, %v903_v53  ;;  %v573_v47 = vmax.f32 %v572_v43, 0.0  ;;  %v583_v9 = vsub.f32 1.0, %v582_v49  ;;  %v1137_v45 = vadd.f32 -29.0, %v1534_v42 }
 0x339   :  { %v853_v17 = vadd.f32 %v1917_v11, %v847_v33  ;;  %v569_v51 = vadd.f32 %v568_v13, %v558_v25  ;;  %v909_v12 = vand.u32 2147483647, %v1166_v31  ;;  %v588_v52 = vstv %s1983_s5 }
 0x33a   :  { %v579_v2 = vmul.f32 %v577_v38, %v573_v47  ;;  %v1167_v54 = vadd.f32 -27.0, %v1627_v32  ;;  %v584_v61 = vmax.f32 %v583_v9, 0.0  ;;  %v593_v0 = vand.u32 2147483647, %v1137_v45 }
 0x33b   :  { %v859_v44 = vadd.f32 %v1921_v26, %v853_v17  ;;  %v888_v56 = vmul.f32 %v887_v50, %v522_v62  ;;  %v893_v35 = vmax.f32 %v892_v59, 0.0  ;;  %v899_v63 = vmax.f32 %v898_v48, 0.0 }
 0x33c   :  { %v580_v11 = vadd.f32 %v579_v2, %v569_v51  ;;  %v590_v3 = vmul.f32 %v588_v52, %v584_v61  ;;  %v1168_v7 = vadd.f32 -28.0, %v1627_v32  ;;  %v594_v29 = vsub.f32 1.0, %v593_v0 }
 0x33d   :  { %v865_v58 = vadd.f32 %v1931_v14, %v859_v44  ;;  %v894_v8 = vmul.f32 %v893_v35, %v533_v4  ;;  %v900_v26 = vmul.f32 %v899_v63, %v544_v22  ;;  %v1138_v62 = vadd.f32 -30.0, %v1534_v42 }
 0x33e   :  { %v905_v1 = vmax.f32 %v904_v46, 0.0  ;;  %v910_v41 = vsub.f32 1.0, %v909_v12  ;;  %v915_v18 = vand.u32 2147483647, %v1167_v54  ;;  %v599_v39 = vstv %s1998_s13 }
 0x33f   :  { %v871_v6 = vadd.f32 %v1935_v28, %v865_v58  ;;  %v591_v24 = vadd.f32 %v590_v3, %v580_v11  ;;  %v595_v27 = vmax.f32 %v594_v29, 0.0  ;;  %v604_v36 = vand.u32 2147483647, %v1138_v62 }
 0x340   :  { %v906_v14 = vmul.f32 %v905_v1, %v555_v34  ;;  %v921_v4 = vand.u32 2147483647, %v1168_v7  ;;  %v1169_v22 = vadd.f32 -29.0, %v1627_v32  ;;  %v1139_v53 = vadd.f32 -31.0, %v1534_v42 }
 0x341   :  { %v877_v16 = vadd.f32 %v1964_v40, %v871_v6  ;;  %v601_v15 = vmul.f32 %v599_v39, %v595_v27  ;;  %v605_v5 = vsub.f32 1.0, %v604_v36  ;;  %v1170_v28 = vadd.f32 -30.0, %v1627_v32 }
 0x342   :  { %v911_v25 = vmax.f32 %v910_v41, 0.0  ;;  %v610_v55 = vstv %s2011_s14  ;;  %v615_v31 = vand.u32 2147483647, %v1139_v53  ;;  %v1140_v34 = vadd.f32 -32.0, %v1534_v42 }
 0x343   :  { %v883_v50 = vadd.f32 %v1969_v30, %v877_v16  ;;  %v916_v59 = vsub.f32 1.0, %v915_v18  ;;  %v602_v43 = vadd.f32 %v601_v15, %v591_v24  ;;  %v606_v49 = vmax.f32 %v605_v5, 0.0 }
 0x344   :  { %v922_v33 = vsub.f32 1.0, %v921_v4  ;;  %v927_v40 = vand.u32 2147483647, %v1169_v22  ;;  %v616_v48 = vsub.f32 1.0, %v615_v31  ;;  %v626_v13 = vand.u32 2147483647, %v1140_v34 }
 0x345   :  { %v889_v46 = vadd.f32 %v888_v56, %v883_v50  ;;  %v612_v47 = vmul.f32 %v610_v55, %v606_v49  ;;  %v933_v9 = vand.u32 2147483647, %v1170_v28  ;;  %v621_v45 = vstv %s2022_s15 }
 0x346   :  { %v617_v17 = vmax.f32 %v616_v48, 0.0  ;;  %v1171_v42 = vadd.f32 -31.0, %v1627_v32  ;;  %v627_v51 = vsub.f32 1.0, %v626_v13  ;;  %v201_v30 = vsub.f32 1.0, %v1743_v60 }
 0x347   :  { %v895_v12 = vadd.f32 %v894_v8, %v889_v46  ;;  %v613_v2 = vadd.f32 %v612_v47, %v602_v43  ;;  %v632_v54 = vstv %s2026_s16  ;;  %v1172_v61 = vadd.f32 -32.0, %v1627_v32 }
 0x348   :  { %v912_v0 = vmul.f32 %v911_v25, %v566_v37  ;;  %v623_v44 = vmul.f32 %v621_v45, %v617_v17  ;;  %v628_v35 = vmax.f32 %v627_v51, 0.0  ;;  %v202_v56 = vmul.f32 %v201_v30, %v1743_v60 }
 0x349   :  { %v901_v63 = vadd.f32 %v900_v26, %v895_v12  ;;  %v917_v11 = vmax.f32 %v916_v59, 0.0  ;;  %v923_v3 = vmax.f32 %v922_v33, 0.0  ;;  %v928_v7 = vsub.f32 1.0, %v927_v40 }
 0x34a   :  { %v624_v29 = vadd.f32 %v623_v44, %v613_v2  ;;  %v634_v58 = vmul.f32 %v632_v54, %v628_v35  ;;  %v211_v8 = vmul.f32 %v1489_v20, %v202_v56  ;;  %v209_v62 = vmul.f32 %v1551_v57, %v202_v56 }
 0x34b   :  { %v907_v1 = vadd.f32 %v906_v14, %v901_v63  ;;  %v934_v32 = vsub.f32 1.0, %v933_v9  ;;  %v939_v41 = vand.u32 2147483647, %v1171_v42  ;;  %v945_v37 = vand.u32 2147483647, %v1172_v61 }
 0x34c   :  { %v635_v18 = vadd.f32 %v634_v58, %v624_v29  ;;  %v212_v60 = vmul.f32 %v211_v8, %v1551_v57  ;;  %v210_v26 = vmul.f32 0.02, %v209_v62  ;;  %v918_v24 = vmul.f32 %v917_v11, %v577_v38 }
 0x34d   :  { %v913_v6 = vadd.f32 %v912_v0, %v907_v1  ;;  %v924_v27 = vmul.f32 %v923_v3, %v588_v52  ;;  %v929_v36 = vmax.f32 %v928_v7, 0.0  ;;  %v935_v53 = vmax.f32 %v934_v32, 0.0 }
 0x34e   :  { %v213_v4 = vmul.f32 -0.02, %v212_v60  ;;  %v2043_v22 = vmul.f32 %v635_v18, %v210_v26  ;;  %v940_v14 = vsub.f32 1.0, %v939_v41  ;;  %v946_v16 = vsub.f32 1.0, %v945_v37 }
 0x34f   :  { %v919_v20 = vadd.f32 %v918_v24, %v913_v6  ;;  %v930_v28 = vmul.f32 %v929_v36, %v599_v39  ;;  %v936_v25 = vmul.f32 %v935_v53, %v610_v55  ;;  %v1363_v40 = vmov 1966171168  }
 0x350   :  { %v639_v15 = vmul.f32 %v635_v18, %v213_v4  ;;  %v941_v31 = vmax.f32 %v940_v14, 0.0  ;;  %v947_v34 = vmax.f32 %v946_v16, 0.0  ;;  %v680_v48 = vunpack.c.l.s4 %v1363_v40 }
 0x351   :  { %v925_v5 = vadd.f32 %v924_v27, %v919_v20  ;;  %v649_v46 = vsub.s32 1, %v1433_v19  ;;  %v653_v39 = vsub.s32 2, %v1433_v19  ;;  %v657_v55 = vsub.s32 3, %v1433_v19 }
 0x352   :  { %640 = vadd.xlane.f32.xlu1 %v639_v15  ;;  %v942_v50 = vmul.f32 %v941_v31, %v621_v45  ;;  %v948_v52 = vmul.f32 %v947_v34, %v632_v54  ;;  %v681_v13 = vunpack.c.0.s8 %v680_v48  ;;  %v661_v47 = vsub.s32 4, %v1433_v19 }
 0x353   :  { %v931_v57 = vadd.f32 %v930_v28, %v925_v5  ;;  %v665_v9 = vsub.s32 5, %v1433_v19  ;;  %v669_v45 = vsub.s32 6, %v1433_v19  ;;  %v673_v17 = vsub.s32 7, %v1433_v19 }
 0x354   :  { %v2055_v51 = vsub.s32 %v681_v13, %v1433_v19 }
 0x355   :  { %v937_v38 = vadd.f32 %v936_v25, %v931_v57 }
 0x357   :  { %v943_v59 = vadd.f32 %v942_v50, %v937_v38 }
 0x359   :  { %v949_v43 = vadd.f32 %v948_v52, %v943_v59  ;;  %v180_v59 = vmin.f32 %v1441_v23, 0.0 }
 0x35b   :  { %v953_v49 = vmul.f32 %v949_v43, %v213_v4  ;;  %v950_v33 = vmul.f32 %v949_v43, %v210_v26  ;;  %v182_v43 = vsel %vm181_vm11, %v180_v59, 0.0 }
 0x35d   :  { %954 = vadd.xlane.f32.xlu0 %v953_v49  ;;  %v729_v49 = vsub.s32 %v1486_v10, %v1433_v19 }
 0x3df   :  { %v641_v42 = vpop.xlane.xlu1 %640 }
 0x3e0   :  { %v646_v30 = vrot.slane %v641_v42, %v1439_v21  ;;  %v650_v12 = vrot.slane %v641_v42, %v649_v46  ;;  %v654_v2 = vrot.slane %v641_v42, %v653_v39  ;;  %v658_v54 = vrot.slane %v641_v42, %v657_v55 }
 0x3e1   :  { %v662_v61 = vrot.slane %v641_v42, %v661_v47  ;;  %v666_v0 = vrot.slane %v641_v42, %v665_v9  ;;  %v670_v44 = vrot.slane %v641_v42, %v669_v45  ;;  %v674_v35 = vrot.slane %v641_v42, %v673_v17 }
 0x3e2   :  { %v675_v56 = vcombine.low %v646_v30, %v650_v12  ;;  %v676_v63 = vcombine.low %v654_v2, %v658_v54  ;;  %v1076_v30 = vadd.s32 4294967280, %v1486_v10 }
 0x3e3   :  { %v677_v11 = vcombine.low %v662_v61, %v666_v0  ;;  %v678_v3 = vcombine.low %v670_v44, %v674_v35 }
 0x3e4   :  { %v685_v7 = vrot.slane %v675_v56, %v2055_v51  ;;  %v692_v29 = vrot.slane %v676_v63, %v2055_v51  ;;  %v1079_v2 = vsub.s32 %v1076_v30, %v1433_v19 }
 0x3e5   :  { %v699_v58 = vrot.slane %v677_v11, %v2055_v51  ;;  %v706_v8 = vrot.slane %v678_v3, %v2055_v51 }
 0x3e6   :  { %v707_v62 = vcombine.low %v685_v7, %v692_v29 }
 0x3e7   :  { %v708_v1 = vcombine.low %v699_v58, %v706_v8 }
 0x3e8   :  { %v715_v32 = vrot.slane %v707_v62, %v2055_v51 }
 0x3e9   :  { %v722_v41 = vrot.slane %v708_v1, %v2055_v51 }
 0x3ea   :  { %v955_v37 = vpop.xlane.xlu0 %954 }
 0x3eb   :  { %v960_v18 = vrot.slane %v955_v37, %v1439_v21  ;;  %v964_v60 = vrot.slane %v955_v37, %v649_v46  ;;  %v968_v26 = vrot.slane %v955_v37, %v653_v39  ;;  %v972_v6 = vrot.slane %v955_v37, %v657_v55 }
 0x3ec   :  { %v976_v24 = vrot.slane %v955_v37, %v661_v47  ;;  %v980_v27 = vrot.slane %v955_v37, %v665_v9  ;;  %v984_v36 = vrot.slane %v955_v37, %v669_v45  ;;  %v988_v4 = vrot.slane %v955_v37, %v673_v17 }
 0x3ed   :  { %v989_v20 = vcombine.low %v960_v18, %v964_v60  ;;  %v990_v53 = vcombine.low %v968_v26, %v972_v6  ;;  %v723_v14 = vcombine.low %v715_v32, %v722_v41 }
 0x3ee   :  { %v991_v16 = vcombine.low %v976_v24, %v980_v27  ;;  %v992_v15 = vcombine.low %v984_v36, %v988_v4 }
 0x3ef   :  { %v999_v5 = vrot.slane %v989_v20, %v2055_v51  ;;  %v1006_v28 = vrot.slane %v990_v53, %v2055_v51  ;;  %725 = vperm.xlu0 %1313, %v723_v14  }
 0x3f0   :  { %v1013_v25 = vrot.slane %v991_v16, %v2055_v51  ;;  %v1020_v57 = vrot.slane %v992_v15, %v2055_v51 }
 0x3f1   :  { %v1021_v31 = vcombine.low %v999_v5, %v1006_v28 }
 0x3f2   :  { %v1022_v34 = vcombine.low %v1013_v25, %v1020_v57 }
 0x3f3   :  { %v1029_v38 = vrot.slane %v1021_v31, %v2055_v51 }
 0x3f4   :  { %v1036_v50 = vrot.slane %v1022_v34, %v2055_v51 }
 0x3f6   :  { %v1037_v52 = vcombine.low %v1029_v38, %v1036_v50 }
 0x3f8   :  { %1039 = vperm.xlu1 %1314, %v1037_v52  }
 0x40e   :  { %951 = vadd.xlane.f32.xlu0 %v950_v33  ;;  %v1323_v33 = vld [vmem:[%s2092_s0] sm:$0x1] }
 0x41c   :  { %637 = vadd.xlane.f32.xlu1 %v2043_v22 }
 0x420   :  { %183 = vadd.xlane.f32.xlu1 %v182_v43 }
 0x46e   :  { %v726_v40 = vpop.permute.xlu0 %725 }
 0x46f   :  { %v730_v48 = vrot.slane %v726_v40, %v729_v49 }
 0x471   :  { %v737_v13 = vrot.slane %v730_v48, %v2055_v51 }
 0x473   :  { %v744_v46 = vrot.slane %v737_v13, %v2055_v51 }
 0x475   :  { %v746_v39 = vmul.f32 %v1323_v33, %v744_v46 }
 0x477   :  { %v1040_v23 = vpop.permute.xlu1 %1039  ;;  %v1071_v22 = vrot.slane %v746_v39, %v1439_v21 }
 0x478   :  { %v1044_v55 = vrot.slane %v1040_v23, %v729_v49 }
 0x479   :  { %1072 = vrot.lane.b32.xlu1 %v1071_v22, %s1364_s19 }
 0x47a   :  { %v1051_v47 = vrot.slane %v1044_v55, %v2055_v51 }
 0x47c   :  { %v1058_v9 = vrot.slane %v1051_v47, %v2055_v51 }
 0x47e   :  { %v1060_v45 = vmul.f32 %v1323_v33, %v1058_v9 }
 0x480   :  { %v1086_v17 = vrot.slane %v1060_v45, %v1439_v21 }
 0x482   :  { %1087 = vrot.lane.b32.xlu0 %v1086_v17, %s1365_s20 }
 0x49b   :  { %v952_v61 = vpop.xlane.xlu0 %951 }
 0x49c   :  { %v1080_v35 = vrot.slane %v952_v61, %v1079_v2 }
 0x4a9   :  { %v638_v42 = vpop.xlane.xlu1 %637 }
 0x4aa   :  { %v1065_v0 = vrot.slane %v638_v42, %v729_v49 }
 0x4ad   :  { %v184_v12 = vpop.xlane.xlu1 %183 }
 0x4eb   :  { %v1073_v54 = vpop.permute.xlu1 %1072 }
 0x4ec   :  { %v1090_v44 = vsel %vm26_vm0, %v1065_v0, %v1073_v54 }
 0x4ed   :  { %v1092_v51 = vsel %vm1091_vm12, %v1090_v44, %v1080_v35 }
 0x4f4   :  { %v1088_v56 = vpop.permute.xlu0 %1087 }
 0x4f5   :  { %v1094_v21 = vsel %vm1093_vm13, %v1092_v51, %v1088_v56 }
 0x4f6   :  { %v1095_v63 = vsel %vm106_vm2, %v1094_v21, %v184_v12 }
 0x4f7   :  { %v1097_v11 = vsel %vm1096_vm14, %v1095_v63, 0.0 }
 0x4f8   :  { %1098 = vst [vmem:[%s2097_s6] sm:$0x1] %v1097_v11 }

</bundles_post_ra>
